<compile_context>
chip_gen: v6e
topology: v6e:2x2x1
jax: 0.10.0
libtpu: 0.0.40
codegen_flags: <defaults>
</compile_context>

<pallas_src>
import functools
import math

import jax
import jax.numpy as jnp
from jax.experimental import pallas as pl
from jax.experimental.pallas import tpu as pltpu

_VMEM_LIMIT = 48 * 1024 * 1024  # fits under v7x's 64 MiB with headroom


def _ceil_to(x, m):
    return ((x + m - 1) // m) * m


# ---------------------------------------------------------------------------
# Fused kernel:  out[i] = sum_k adj[i,k] @ (x[k] @ W) + bias
#   grid = (row tiles, K tiles); output block resident across the K axis.
# ---------------------------------------------------------------------------
def _gnn_fused_kernel(x_ref, w_ref, adj_ref, b_ref, o_ref, *, precision):
    k = pl.program_id(1)

    @pl.when(k == 0)
    def _():
        # Output block is resident across the whole K reduction (its index_map
        # is constant in k): init the accumulator directly with the bias.
        o_ref[...] = jnp.zeros_like(o_ref) + b_ref[...]

    # Support tile for this K slab, computed on the fly (W resident in VMEM).
    s = jnp.dot(x_ref[...], w_ref[...],
                preferred_element_type=jnp.float32, precision=precision)
    o_ref[...] += jnp.dot(adj_ref[...], s.astype(adj_ref.dtype),
                          preferred_element_type=jnp.float32,
                          precision=precision)


def gnn_layer(x, w, adj, bias=None, *, tile_n=None, tile_k=None,
              operand_dtype=jnp.bfloat16):
    """output = adj @ (x @ w) + bias  (GNN_Layer.forward)."""
    n, f_in = x.shape
    f_in_w, f_out = w.shape
    assert f_in_w == f_in
    assert adj.shape == (n, n)

    # Large tiles (HBM-bound op; footprint is only a few MiB even at 512^2).
    tile_n = tile_n or 512
    tile_k = tile_k or 512

    n_pad0 = _ceil_to(n, 128)
    tile_n = min(tile_n, n_pad0)
    tile_k = min(tile_k, n_pad0)
    # With the (equal, power-of-two x 128) defaults the lcm == max(tile), so
    # padding is bounded by one tile.
    n_pad = _ceil_to(n_pad0, math.lcm(tile_n, tile_k))

    # Give the "parallel" row axis >= 2 tiles when possible (v7x megacore).
    if n_pad // tile_n < 2:
        half = tile_n // 2
        if half >= 8 and n_pad % half == 0:
            tile_n = half

    f_out_pad = _ceil_to(f_out, 128)  # lane-dense (unmasked) output stores

    # --- operand prep (cast to streaming dtype; pad only when needed) -------
    x_p = x if x.dtype == operand_dtype else x.astype(operand_dtype)
    if n_pad != n:
        x_p = jnp.pad(x_p, ((0, n_pad - n), (0, 0)))

    w_p = w if w.dtype == operand_dtype else w.astype(operand_dtype)
    if f_out_pad != f_out:
        w_p = jnp.pad(w_p, ((0, 0), (0, f_out_pad - f_out)))

    # adj is reused across layers: callers holding it in operand_dtype already
    # pay nothing here (no extra HBM pass).
    adj_p = adj if adj.dtype == operand_dtype else adj.astype(operand_dtype)
    if n_pad != n:
        adj_p = jnp.pad(adj_p, ((0, n_pad - n), (0, n_pad - n)))

    if bias is None:
        bias = jnp.zeros((f_out,), jnp.float32)
    b2d = bias.astype(jnp.float32).reshape(1, f_out)
    if f_out_pad != f_out:
        b2d = jnp.pad(b2d, ((0, 0), (0, f_out_pad - f_out)))

    precision = (jax.lax.Precision.HIGHEST
                 if jnp.dtype(operand_dtype) == jnp.dtype(jnp.float32)
                 else None)

    out = pl.pallas_call(
        functools.partial(_gnn_fused_kernel, precision=precision),
        out_shape=jax.ShapeDtypeStruct((n_pad, f_out_pad), jnp.float32),
        grid_spec=pltpu.PrefetchScalarGridSpec(
            num_scalar_prefetch=0,
            grid=(n_pad // tile_n, n_pad // tile_k),
            in_specs=[
                pl.BlockSpec((tile_k, f_in), lambda i, k: (k, 0)),       # x
                pl.BlockSpec((f_in, f_out_pad), lambda i, k: (0, 0)),    # W
                pl.BlockSpec((tile_n, tile_k), lambda i, k: (i, k)),     # adj
                pl.BlockSpec((1, f_out_pad), lambda i, k: (0, 0)),       # bias
            ],
            out_specs=pl.BlockSpec((tile_n, f_out_pad), lambda i, k: (i, 0)),
        ),
        compiler_params=pltpu.CompilerParams(
            dimension_semantics=("parallel", "arbitrary"),
            vmem_limit_bytes=_VMEM_LIMIT,
        ),
    )(x_p, w_p, adj_p, b2d)

    return out[:n, :f_out]


if __name__ == "__main__":
    # Small shapes consistent with the module: N nodes, in/out feature dims.
    N, IN_FEATURES, OUT_FEATURES = 128, 64, 128

    key = jax.random.PRNGKey(0)
    k_x, k_adj, k_w, k_b = jax.random.split(key, 4)

    # Parameter init mirroring reset_parameters(): uniform(-stdv, stdv),
    # stdv = 1/sqrt(out_features).
    stdv = 1.0 / math.sqrt(OUT_FEATURES)
    weight = jax.random.uniform(
        k_w, (IN_FEATURES, OUT_FEATURES), jnp.float32, -stdv, stdv)
    bias = jax.random.uniform(k_b, (OUT_FEATURES,), jnp.float32, -stdv, stdv)

    # Example inputs: node features + dense row-normalized adjacency.
    x = jax.random.normal(k_x, (N, IN_FEATURES), jnp.float32)
    adj = jax.random.uniform(k_adj, (N, N), jnp.float32)
    adj = (adj > 0.9).astype(jnp.float32)              # sparse-ish pattern
    adj = adj + jnp.eye(N, dtype=jnp.float32)          # self loops
    adj = adj / jnp.sum(adj, axis=1, keepdims=True)    # row-normalize

    ref = adj @ (x @ weight) + bias[None, :]

    # Full-precision path: tight-tolerance check of the kernel structure.
    out_f32 = jax.block_until_ready(
        gnn_layer(x, weight, adj, bias, operand_dtype=jnp.float32))
    assert out_f32.shape == (N, OUT_FEATURES)
    assert jnp.allclose(out_f32, ref, atol=1e-4, rtol=1e-4)

    # bf16 streaming path (the performance configuration): adj is cast once
    # outside the layer (it is reused across layers), f32 accumulation inside.
    adj_bf16 = adj.astype(jnp.bfloat16)
    out_bf16 = jax.block_until_ready(
        gnn_layer(x, weight, adj_bf16, bias, operand_dtype=jnp.bfloat16))
    assert out_bf16.shape == (N, OUT_FEATURES)
    assert jnp.allclose(out_bf16, ref, atol=2e-2, rtol=2e-2)

    print("KERNEL_OK")
</pallas_src>

<mosaic_0001>
module attributes {stable_mosaic.version = 11 : i64} {
  func.func @_gnn_fused_kernel(%arg0: i32, %arg1: i32, %arg2: memref<128x64xf32, #tpu.memory_space<vmem>>, %arg3: memref<64x128xf32, #tpu.memory_space<vmem>>, %arg4: memref<64x128xf32, #tpu.memory_space<vmem>>, %arg5: memref<1x128xf32, #tpu.memory_space<vmem>>, %arg6: memref<64x128xf32, #tpu.memory_space<vmem>>) attributes {dimension_semantics = [#tpu.dimension_semantics<parallel>, #tpu.dimension_semantics<arbitrary>], iteration_bounds = array<i64: 2, 1>, scalar_prefetch = 0 : i64, scratch_operands = 0 : i64, tpu.core_type = #tpu.core_type<tc>, window_params = [{transform_indices = @transform_0, window_bounds = array<i64: 128, 64>}, {pipeline_mode = #tpu.pipeline_mode<synchronous>, transform_indices = @transform_1, window_bounds = array<i64: 64, 128>}, {transform_indices = @transform_2, window_bounds = array<i64: 64, 128>}, {pipeline_mode = #tpu.pipeline_mode<synchronous>, transform_indices = @transform_3, window_bounds = array<i64: 1, 128>}, {transform_indices = @transform_4, window_bounds = array<i64: 64, 128>}]} {
    %c0_i32 = arith.constant 0 : i32
    %0 = arith.cmpi eq, %arg1, %c0_i32 : i32
    %1 = arith.extui %0 : i1 to i32
    %c0_i32_0 = arith.constant 0 : i32
    %2 = arith.cmpi ne, %1, %c0_i32_0 : i32
    scf.if %2 {
      %cst_11 = arith.constant 0.000000e+00 : f32
      %11 = vector.broadcast %cst_11 : f32 to vector<64x128xf32>
      %c0_12 = arith.constant 0 : index
      %c0_13 = arith.constant 0 : index
      %12 = vector.load %arg5[%c0_12, %c0_13] : memref<1x128xf32, #tpu.memory_space<vmem>>, vector<1x128xf32>
      %13 = vector.broadcast %12 : vector<1x128xf32> to vector<64x128xf32>
      %14 = arith.addf %11, %13 : vector<64x128xf32>
      %c0_14 = arith.constant 0 : index
      %c0_15 = arith.constant 0 : index
      %15 = vector.load %arg6[%c0_14, %c0_15] : memref<64x128xf32, #tpu.memory_space<vmem>>, vector<64x128xf32>
      tpu.vector_store %arg6[%c0_14, %c0_15], %14 {strides = array<i32>} : memref<64x128xf32, #tpu.memory_space<vmem>>, vector<64x128xf32>,
    } else {
    }
    %c0 = arith.constant 0 : index
    %c0_1 = arith.constant 0 : index
    %3 = vector.load %arg2[%c0, %c0_1] : memref<128x64xf32, #tpu.memory_space<vmem>>, vector<128x64xf32>
    %c0_2 = arith.constant 0 : index
    %c0_3 = arith.constant 0 : index
    %4 = vector.load %arg3[%c0_2, %c0_3] : memref<64x128xf32, #tpu.memory_space<vmem>>, vector<64x128xf32>
    %cst = arith.constant dense<0.000000e+00> : vector<128x128xf32>
    %5 = tpu.matmul %3, %4, %cst {dimension_numbers = #tpu.dot_dimension_numbers<[1], [0], [0], [1], [0, 0, 1, 1], [], []>, precision = #tpu.contract_precision<fp32>} : vector<128x64xf32>, vector<64x128xf32>, vector<128x128xf32> -> vector<128x128xf32>
    %c0_4 = arith.constant 0 : index
    %c0_5 = arith.constant 0 : index
    %6 = vector.load %arg6[%c0_4, %c0_5] : memref<64x128xf32, #tpu.memory_space<vmem>>, vector<64x128xf32>
    %c0_6 = arith.constant 0 : index
    %c0_7 = arith.constant 0 : index
    %7 = vector.load %arg4[%c0_6, %c0_7] : memref<64x128xf32, #tpu.memory_space<vmem>>, vector<64x128xf32>
    %cst_8 = arith.constant dense<0.000000e+00> : vector<64x128xf32>
    %8 = tpu.matmul %7, %5, %cst_8 {dimension_numbers = #tpu.dot_dimension_numbers<[1], [0], [0], [1], [0, 0, 1, 1], [], []>, precision = #tpu.contract_precision<fp32>} : vector<64x128xf32>, vector<128x128xf32>, vector<64x128xf32> -> vector<64x128xf32>
    %9 = arith.addf %6, %8 : vector<64x128xf32>
    %c0_9 = arith.constant 0 : index
    %c0_10 = arith.constant 0 : index
    %10 = vector.load %arg6[%c0_9, %c0_10] : memref<64x128xf32, #tpu.memory_space<vmem>>, vector<64x128xf32>
    tpu.vector_store %arg6[%c0_9, %c0_10], %9 {strides = array<i32>} : memref<64x128xf32, #tpu.memory_space<vmem>>, vector<64x128xf32>,
    return
  }
  func.func @transform_0(%arg0: i32, %arg1: i32) -> (i32, i32) {
    %c0_i32 = arith.constant 0 : i32
    %c0_i32_0 = arith.constant 0 : i32
    return %arg1, %c0_i32 : i32, i32
  }
  func.func @transform_1(%arg0: i32, %arg1: i32) -> (i32, i32) {
    %c0_i32 = arith.constant 0 : i32
    %c0_i32_0 = arith.constant 0 : i32
    %c0_i32_1 = arith.constant 0 : i32
    return %c0_i32, %c0_i32_0 : i32, i32
  }
  func.func @transform_2(%arg0: i32, %arg1: i32) -> (i32, i32) {
    %c0_i32 = arith.constant 0 : i32
    return %arg0, %arg1 : i32, i32
  }
  func.func @transform_3(%arg0: i32, %arg1: i32) -> (i32, i32) {
    %c0_i32 = arith.constant 0 : i32
    %c0_i32_0 = arith.constant 0 : i32
    %c0_i32_1 = arith.constant 0 : i32
    return %c0_i32, %c0_i32_0 : i32, i32
  }
  func.func @transform_4(%arg0: i32, %arg1: i32) -> (i32, i32) {
    %c0_i32 = arith.constant 0 : i32
    %c0_i32_0 = arith.constant 0 : i32
    return %arg0, %c0_i32 : i32, i32
  }
}

</mosaic_0001>

<bundles_post_ra>
// kernel: tpu_custom_call.1
= control target key start
LH: loop header
LB: loop body
LE: loop exit
PB: predicated region body
PF: predicated region fallthrough
CT: control target
= control target key end

     0   :  { %9 = vsyncpa [#allocation3], 0  ;;  %s4763_s0 = inlined_call_operand.vmem [shape: f32[128,64], index: 0, kind: input, shape index: {}]   ;;  %s4764_s1 = inlined_call_operand.vmem [shape: f32[64,128], index: 1, kind: input, shape index: {}]   ;;  %s4765_s2 = inlined_call_operand.vmem [shape: f32[128,128], index: 2, kind: input, shape index: {}]   ;;  %s4766_s3 = inlined_call_operand.vmem [shape: f32[1,128], index: 3, kind: input, shape index: {}]   ;;  %s4767_s4 = inlined_call_operand.hbm [shape: f32[128,128], index: 4, kind: output, shape index: {}]  }
   0x1   :  { %11 = vsyncpa [#allocation3 + $0x1], 0  ;;  %s3566_s15 = smov 0   ;;  %s3568_s16 = smov 0  }
   0x2   :  { %s3570_s17 = smov 0   ;;  %s3572_s18 = smov 0  }
   0x3   :  { %s3574_s19 = smov 0   ;;  %s3576_s20 = smov 0  }
   0x4 LB: > { %s2595_s21 = sadd.s32 4294967295, %s3536_s20   ;;  %s2596_s22 = sadd.s32 4294967294, %s3536_s20   ;;  %s3536_s20 = sphi %s3576_s20, %s17_s20   ;;  %s3532_s19 = sphi %s3574_s19, %s4844_s19   ;;  %s3528_s18 = sphi %s3572_s18, %s4843_s18   ;;  %s3524_s17 = sphi %s3570_s17, %s4842_s17   ;;  %s3520_s16 = sphi %s3568_s16, %s4841_s16   ;;  %s3516_s15 = sphi %s3566_s15, %s4840_s15  }
   0x5   : > { %s29_s23 = sadd.s32 1, %s3532_s19  ;;  %s132_s24 = sadd.s32 1, %s3524_s17 }
   0x6   : > { %p31_p0 = scmp.ge.s32.totalorder %s29_s23, 2  ;;  %p142_p1 = scmp.ne.s32.totalorder %s3524_s17, %s3520_s16 }
   0x7   : > { %p143_p2 = scmp.eq.s32.totalorder %s2595_s21, 1  ;;  %p148_p3 = scmp.ne.s32.totalorder %s3520_s16, %s3516_s15 }
   0x8   : > { %s4846_s23 = smov (%p31_p0, %s29_s23), 0  ;;  %p149_p5 = scmp.eq.s32.totalorder %s2596_s22, 1 }
   0x9   : > { %p3606_p4 = por %p143_p2, %p142_p1  ;;  %s129_s26 = ssub.s32 %s3532_s19, %s4846_s23 }
   0xa   : > { %p2600_p6 = scmp.ge.s32.totalorder %s3536_s20, 1  ;;  %p130_p7 = scmp.eq.s32.totalorder %s129_s26, 0 }
   0xb   : > { %p3613_p8 = por %p149_p5, %p148_p3  ;;  %p194_p9 = scmp.lt.s32.totalorder %s3536_s20, 3 }
   0xc   : > { %s3619_s28 = scalar_select %p130_p7, %s3524_s17, %s132_s24  }
   0xd   : > { %p195_p10 = pnand %p2600_p6, %p194_p9 }
   0xf   : > { %198 = sbr.rel (%p195_p10) target bundleno = 682 (0x2aa), region = 36 }
  0x14   : > { %v287_v0 = vld [vmem:[%s4764_s1 + $0x38] sm:$0xff]  ;;  %v286_v1 = vld [vmem:[%s4764_s1 + $0x30] sm:$0xff]  ;;  %v285_v2 = vld [vmem:[%s4764_s1 + $0x28] sm:$0xff]  ;;  %vm288_vm0 = vcmask 523264   ;;  %s2602_s29 = sshll.u32 %s3528_s18, 3  ;;  %s225_s8 = sand.u32 1, %s3520_s16  }
  0x15   : > { %v3630_v3 = vand.u32 4294901760, %v287_v0  ;;  %v3632_v4 = vand.u32 4294901760, %v286_v1  ;;  %v3634_v5 = vand.u32 4294901760, %v285_v2  ;;  %v284_v6 = vld [vmem:[%s4764_s1 + $0x20] sm:$0xff]  ;;  %v283_v7 = vld [vmem:[%s4764_s1 + $0x18] sm:$0xff]  ;;  %v282_v8 = vld [vmem:[%s4764_s1 + $0x10] sm:$0xff] }
  0x16   : > { %v3645_v9 = vand.u32 4294901760, %v284_v6  ;;  %v3647_v10 = vand.u32 4294901760, %v283_v7  ;;  %v3649_v11 = vand.u32 4294901760, %v282_v8  ;;  %v281_v12 = vld [vmem:[%s4764_s1 + $0x8] sm:$0xff]  ;;  %v3657_v13 = vld [vmem:[%s4764_s1] sm:$0xff]  ;;  %v266_v40 = vld [vmem:[%s4763_s0 + $0x10] sm:$0xff] }
  0x17   : > { %v264_v14 = vld [vmem:[%s4763_s0] sm:$0xff]  ;;  %2899 = vmatprep.subr.mxu0 %v3630_v3  ;;  %v3664_v15 = vsub.f32 %v287_v0, %v3630_v3  ;;  %v3667_v16 = vsub.f32 %v286_v1, %v3632_v4  ;;  %v3669_v17 = vand.u32 4294901760, %v281_v12  ;;  %v3672_v18 = vsub.f32 %v285_v2, %v3634_v5  ;;  %v265_v19 = vld [vmem:[%s4763_s0 + $0x8] sm:$0xff]  ;;  %v267_v41 = vld [vmem:[%s4763_s0 + $0x18] sm:$0xff]  ;;  %p235_p11 = scmp.lt.s32.totalorder %s2602_s29, 15  ;;  %s2601_s9 = sshll.u32 %s225_s8, 6 }
  0x18   : > { %2900 = vmatpush3.msra.mxu0 %v3630_v3  ;;  %v3679_v20 = vand.u32 4294901760, %v3657_v13  ;;  %v3682_v21 = vsub.f32 %v284_v6, %v3645_v9  ;;  %v290_v22 = vsel %vm288_vm0, %v264_v14, 0  ;;  %v293_v23 = vsel %vm288_vm0, %v265_v19, 0  ;;  %v268_v54 = vld [vmem:[%s4763_s0 + $0x20] sm:$0xff]  ;;  %v269_v55 = vld [vmem:[%s4763_s0 + $0x28] sm:$0xff]  ;;  %v270_v0 = vld [vmem:[%s4763_s0 + $0x30] sm:$0xff] }
  0x19   : > { %2901 = vmatprep.subr.mxu0 %v3632_v4  ;;  %v3688_v24 = vand.u32 4294901760, %v3664_v15  ;;  %v3691_v25 = vand.u32 4294901760, %v3667_v16  ;;  %v3694_v26 = vand.u32 4294901760, %v3672_v18  ;;  %v3696_v27 = vand.u32 4294901760, %v290_v22  ;;  %v271_v1 = vld [vmem:[%s4763_s0 + $0x38] sm:$0xff]  ;;  %s4848_s29 = smov (!%p235_p11, %s2602_s29), 15 }
  0x1a   : > { %2902 = vmatpush3.msra.mxu0 %v3632_v4  ;;  %v3700_v28 = vand.u32 4294901760, %v3682_v21  ;;  %v3702_v29 = vand.u32 4294901760, %v293_v23  ;;  %v3705_v30 = vsub.f32 %v283_v7, %v3647_v10  ;;  %v3708_v31 = vsub.f32 %v282_v8, %v3649_v11  ;;  %s2603_s30 = sshll.u32 %s4848_s29, 3  ;;  %s4697_s12 = scalar_lea.vmem [#allocation2], %s2601_s9 }
  0x1b   : > { %2903 = vmatprep.subr.mxu0 %v3634_v5  ;;  %v590_v32 = vsub.f32 %v3664_v15, %v3688_v24  ;;  %v597_v33 = vsub.f32 %v3667_v16, %v3691_v25  ;;  %v604_v34 = vsub.f32 %v3672_v18, %v3694_v26  ;;  %v3718_v35 = vsub.f32 %v290_v22, %v3696_v27  ;;  %s4121_s7 = scalar_lea.vmem %s4765_s2, %s2603_s30  ;;  %s2610_s13 = sshll.u32 %s3528_s18, 10 }
  0x1c   : > { %2904 = vmatpush3.msra.mxu0 %v3634_v5  ;;  %v611_v36 = vsub.f32 %v3682_v21, %v3700_v28  ;;  %v3724_v37 = vsub.f32 %v293_v23, %v3702_v29  ;;  %v3727_v38 = vand.u32 4294901760, %v3705_v30  ;;  %v3730_v39 = vand.u32 4294901760, %v3708_v31  ;;  %2955 = vmatprep.mubr.f32.mxu1 %v3696_v27  ;;  %s2507_s14 = sshll.u32 %s4697_s12, 4  ;;  %s4710_s24 = scalar_lea.hbm %s4767_s4, %s2610_s13  ;;  %s4712_s14 = int_to_ptr.vmem [resolvable:$true] %s2507_s14 }
  0x1d   : > { %2905 = vmatprep.subr.mxu0 %v3645_v9  ;;  %v591_v42 = vand.u32 4294901760, %v590_v32  ;;  %v598_v43 = vand.u32 4294901760, %v597_v33  ;;  %v605_v44 = vand.u32 4294901760, %v604_v34  ;;  %v4777_v45 = vand.u32 4294901760, %v3718_v35  ;;  %v272_v34 = vld [vmem:[%s4763_s0 + $0x40] sm:$0xff]  ;;  %s4718_s18 = scalar_lea.sflag [#allocation3], %s225_s8 }
  0x1e   : > { %2906 = vmatpush3.msra.mxu0 %v3645_v9  ;;  %v612_v46 = vand.u32 4294901760, %v611_v36  ;;  %v4775_v47 = vand.u32 4294901760, %v3724_v37  ;;  %v618_v48 = vsub.f32 %v3705_v30, %v3727_v38  ;;  %v625_v49 = vsub.f32 %v3708_v31, %v3730_v39  ;;  %s3460_s26 = scalar_lea.vmem %s4712_s14, 1024  ;;  %s3538_s29 = smov [#allocation2]  }
  0x1f   : > { %2907 = vmatprep.subr.mxu0 %v3647_v10  ;;  %2939 = vmatprep.subr.mxu1 %v591_v42  ;;  %v413_v50 = vsub.f32 %v3718_v35, %v4777_v45  ;;  %v296_v51 = vsel %vm288_vm0, %v266_v40, 0  ;;  %v299_v52 = vsel %vm288_vm0, %v267_v41, 0  ;;  %v3754_v53 = vsub.f32 %v281_v12, %v3669_v17  ;;  %p3461_p12 = scmp.ne.s32.totalorder %s4712_s14, %s3460_s26  ;;  %s3464_s30 = sshll.u32 %s3538_s29, 4  ;;  %s3465_s30 = int_to_ptr.vmem [resolvable:$false] %s3464_s30 }
  0x20   : > { %2908 = vmatpush3.msra.mxu0 %v3647_v10  ;;  %2940 = vmatpush3.msra.mxu1 %v591_v42  ;;  %v423_v56 = vsub.f32 %v3724_v37, %v4775_v47  ;;  %v619_v57 = vand.u32 4294901760, %v618_v48  ;;  %v3766_v58 = vand.u32 4294901760, %v625_v49  ;;  %v3768_v59 = vand.u32 4294901760, %v296_v51  ;;  %s3466_s5 = scalar_lea.vmem %s3465_s30, 2048  ;;  %p3467_p1 = scmp.lt.s32.totalorder %s4712_s14, %s3465_s30 }
  0x21   : > { %2909 = vmatprep.subr.mxu0 %v3649_v11  ;;  %2941 = vmatprep.subr.mxu1 %v598_v43  ;;  %v414_v60 = vand.u32 4294901760, %v413_v50  ;;  %v3771_v61 = vand.u32 4294901760, %v299_v52  ;;  %v3774_v62 = vand.u32 4294901760, %v3754_v53  ;;  %v3778_v63 = vsub.f32 %v3657_v13, %v3679_v20  ;;  %v273_v50 = vld [vmem:[%s4763_s0 + $0x48] sm:$0xff]  ;;  %p3462_p13 = pnand %p3461_p12, %p3606_p4  ;;  %p3468_p2 = scmp.lt.s32.totalorder %s3466_s5, %s3460_s26 }
  0x22   : > { %2910 = vmatpush3.msra.mxu0 %v3649_v11  ;;  %2942 = vmatpush3.msra.mxu1 %v598_v43  ;;  %v424_v2 = vand.u32 4294901760, %v423_v56  ;;  %v3788_v6 = vsub.f32 %v296_v51, %v3768_v59  ;;  %v302_v7 = vsel %vm288_vm0, %v268_v54, 0  ;;  %v305_v8 = vsel %vm288_vm0, %v269_v55, 0 }
  0x23   : > { %2911 = vmatprep.subr.mxu0 %v3669_v17  ;;  %2943 = vmatprep.subr.mxu1 %v605_v44  ;;  %v3794_v12 = vsub.f32 %v299_v52, %v3771_v61  ;;  %v632_v13 = vsub.f32 %v3754_v53, %v3774_v62  ;;  %v3799_v14 = vand.u32 4294901760, %v3778_v63  ;;  %v3801_v19 = vand.u32 4294901760, %v302_v7  ;;  %p3463_p0 = pneg %p3462_p13  ;;  %p3469_p3 = por %p3468_p2, %p3467_p1 }
  0x24   : > { %2912 = vmatpush3.msra.mxu0 %v3669_v17  ;;  %2944 = vmatpush3.msra.mxu1 %v605_v44  ;;  %v4773_v22 = vand.u32 4294901760, %v3788_v6  ;;  %v3805_v23 = vand.u32 4294901760, %v305_v8  ;;  %v308_v32 = vsel %vm288_vm0, %v270_v0, 0  ;;  %v311_v33 = vsel %vm288_vm0, %v271_v1, 0  ;;  %v274_v1 = vld [vmem:[%s4763_s0 + $0x50] sm:$0xff] }
  0x25   : > { %4792 = vst [vmem:[#allocation5_spill] sm:$0xff] %v3801_v19  ;;  %2913 = vmatprep.subr.mxu0 %v3679_v20  ;;  %2945 = vmatprep.subr.mxu1 %v612_v46  ;;  %v4772_v36 = vand.u32 4294901760, %v3794_v12  ;;  %v633_v40 = vand.u32 4294901760, %v632_v13  ;;  %v639_v41 = vsub.f32 %v3778_v63, %v3799_v14  ;;  %v3817_v42 = vsub.f32 %v302_v7, %v3801_v19  ;;  %p3470_p5 = pnand %p3469_p3, %p3463_p0 }
  0x26   : > { %2914 = vmatpush3.msra.mxu0 %v3679_v20  ;;  %2915 = vmatprep.mubr.f32.mxu0 %v414_v60  ;;  %v433_v43 = vsub.f32 %v3788_v6, %v4773_v22  ;;  %v3824_v44 = vsub.f32 %v305_v8, %v3805_v23  ;;  %v3826_v48 = vand.u32 4294901760, %v308_v32  ;;  %v3828_v49 = vand.u32 4294901760, %v311_v33 }
  0x27   : > { %2946 = vmatpush3.msra.mxu1 %v612_v46  ;;  %2916 = vmatmul.mubr.f32.vlgmr.msra.gmra.mxu0 %v424_v2  ;;  %v443_v51 = vsub.f32 %v3794_v12, %v4772_v36  ;;  %v640_v52 = vand.u32 4294901760, %v639_v41  ;;  %v4769_v54 = vand.u32 4294901760, %v3817_v42  ;;  %v314_v55 = vsel %vm288_vm0, %v272_v34, 0  ;;  %v275_v2 = vld [vmem:[%s4763_s0 + $0x58] sm:$0xff] }
  0x28   : > { %2947 = vmatprep.subr.mxu1 %v619_v57  ;;  %v434_v56 = vand.u32 4294901760, %v433_v43  ;;  %2979 = vmatprep.subr.mxu0 %v3664_v15  ;;  %v4768_v60 = vand.u32 4294901760, %v3824_v44  ;;  %v3841_v0 = vsub.f32 %v308_v32, %v3826_v48  ;;  %v3844_v46 = vsub.f32 %v311_v33, %v3828_v49 }
  0x29   : > { %2948 = vmatpush3.msra.mxu1 %v619_v57  ;;  %v444_v7 = vand.u32 4294901760, %v443_v51  ;;  %v453_v8 = vsub.f32 %v3817_v42, %v4769_v54  ;;  %2980 = vmatpush3.msra.mxu0 %v3664_v15  ;;  %v3856_v13 = vand.u32 4294901760, %v314_v55  ;;  %v317_v32 = vsel %vm288_vm0, %v273_v50, 0  ;;  %v276_v15 = vld [vmem:[%s4763_s0 + $0x60] sm:$0xff] }
  0x2a   : > { %2949 = vmatprep.subr.mxu1 %v3766_v58  ;;  %2918 = vmatprep.mubr.f32.mxu0 %v434_v56  ;;  %v463_v33 = vsub.f32 %v3824_v44, %v4768_v60  ;;  %v4771_v57 = vand.u32 4294901760, %v3841_v0  ;;  %v4770_v34 = vand.u32 4294901760, %v3844_v46  ;;  %v3865_v41 = vand.u32 4294901760, %v317_v32 }
  0x2b   : > { %2950 = vmatpush3.msra.mxu1 %v3766_v58  ;;  %2919 = vmatmul.mubr.f32.gmra.mxu0 %v444_v7  ;;  %v454_v43 = vand.u32 4294901760, %v453_v8  ;;  %v3872_v50 = vsub.f32 %v314_v55, %v3856_v13  ;;  %v320_v51 = vsel %vm288_vm0, %v274_v1, 0  ;;  %v323_v56 = vsel %vm288_vm0, %v275_v2, 0  ;;  %v277_v55 = vld [vmem:[%s4763_s0 + $0x68] sm:$0xff] }
  0x2c   : > { %2951 = vmatprep.subr.mxu1 %v633_v40  ;;  %v464_v60 = vand.u32 4294901760, %v463_v33  ;;  %2981 = vmatprep.subr.mxu0 %v3667_v16  ;;  %v473_v54 = vsub.f32 %v3841_v0, %v4771_v57  ;;  %v483_v58 = vsub.f32 %v3844_v46, %v4770_v34  ;;  %v3884_v7 = vsub.f32 %v317_v32, %v3865_v41  ;;  %v278_v34 = vld [vmem:[%s4763_s0 + $0x70] sm:$0xff] }
  0x2d   : > { %2952 = vmatpush3.msra.mxu1 %v633_v40  ;;  %2921 = vmatprep.mubr.f32.mxu0 %v454_v43  ;;  %v4774_v1 = vand.u32 4294901760, %v3872_v50  ;;  %v3890_v2 = vand.u32 4294901760, %v320_v51  ;;  %v3892_v8 = vand.u32 4294901760, %v323_v56  ;;  %v326_v33 = vsel %vm288_vm0, %v276_v15, 0 }
  0x2e   : > { %2953 = vmatprep.subr.mxu1 %v640_v52  ;;  %v474_v32 = vand.u32 4294901760, %v473_v54  ;;  %2982 = vmatpush3.msra.mxu0 %v3667_v16  ;;  %v484_v57 = vand.u32 4294901760, %v483_v58  ;;  %v4776_v40 = vand.u32 4294901760, %v3884_v7  ;;  %v3900_v43 = vand.u32 4294901760, %v326_v33  ;;  %v279_v16 = vld [vmem:[%s4763_s0 + $0x78] sm:$0xff] }
  0x2f   : > { %2954 = vmatpush3.msra.mxu1 %v640_v52  ;;  %2922 = vmatmul.mubr.f32.gmra.mxu0 %v464_v60  ;;  %v493_v36 = vsub.f32 %v3872_v50, %v4774_v1  ;;  %v3906_v15 = vsub.f32 %v320_v51, %v3890_v2  ;;  %v3909_v22 = vsub.f32 %v323_v56, %v3892_v8  ;;  %v329_v54 = vsel %vm288_vm0, %v277_v55, 0 }
  0x30   : > { %2956 = vmatmul.mubr.f32.vlgmr.msra.gmra.mxu1 %v3702_v29  ;;  %3019 = vmatprep.subr.mxu1 %v3630_v3  ;;  %v503_v52 = vsub.f32 %v3884_v7, %v4776_v40  ;;  %v3921_v60 = vsub.f32 %v326_v33, %v3900_v43  ;;  %v3923_v51 = vand.u32 4294901760, %v329_v54  ;;  %v332_v56 = vsel %vm288_vm0, %v278_v34, 0 }
  0x31   : > { %3020 = vmatpush3.msra.mxu1 %v3630_v3  ;;  %2924 = vmatprep.mubr.f32.mxu0 %v474_v32  ;;  %v494_v58 = vand.u32 4294901760, %v493_v36  ;;  %v4778_v55 = vand.u32 4294901760, %v3906_v15  ;;  %v4779_v1 = vand.u32 4294901760, %v3909_v22  ;;  %v3929_v47 = vand.u32 4294901760, %v332_v56 }
  0x32   : > { %2958 = vmatprep.mubr.f32.mxu1 %v3768_v59  ;;  %3021 = vmatprep.subr.mxu1 %v3632_v4  ;;  %v504_v33 = vand.u32 4294901760, %v503_v52  ;;  %v3935_v45 = vsub.f32 %v329_v54, %v3923_v51  ;;  %v335_v34 = vsel %vm288_vm0, %v279_v16, 0  ;;  %v4793_v16 = vand.u32 4294901760, %v3921_v60 }
  0x33   : > { %2925 = vmatmul.mubr.f32.gmra.mxu0 %v484_v57  ;;  %3022 = vmatpush3.msra.mxu1 %v3632_v4  ;;  %v513_v36 = vsub.f32 %v3906_v15, %v4778_v55  ;;  %v523_v32 = vsub.f32 %v3909_v22, %v4779_v1  ;;  %v3946_v52 = vsub.f32 %v332_v56, %v3929_v47  ;;  %v3948_v40 = vand.u32 4294901760, %v335_v34 }
  0x34   : > { %2959 = vmatmul.mubr.f32.gmra.mxu1 %v3771_v61  ;;  %2983 = vmatprep.subr.mxu0 %v3672_v18  ;;  %v542_v57 = vand.u32 4294901760, %v3935_v45  ;;  %v533_v55 = vsub.f32 %v3921_v60, %v4793_v16 }
  0x35   : > { %2927 = vmatprep.mubr.f32.mxu0 %v494_v58  ;;  %2961 = vmatprep.mubr.f32.mxu1 %v3801_v19  ;;  %v514_v54 = vand.u32 4294901760, %v513_v36  ;;  %v552_v1 = vand.u32 4294901760, %v3946_v52  ;;  %v3959_v56 = vsub.f32 %v335_v34, %v3948_v40  ;;  %v524_v58 = vand.u32 4294901760, %v523_v32 }
  0x36   : > { %2984 = vmatpush3.msra.mxu0 %v3672_v18  ;;  %3023 = vmatprep.subr.mxu1 %v3634_v5  ;;  %v543_v36 = vsub.f32 %v3935_v45, %v542_v57  ;;  %v534_v18 = vand.u32 4294901760, %v533_v55 }
  0x37   : > { %2928 = vmatmul.mubr.f32.gmra.mxu0 %v504_v33  ;;  %3024 = vmatpush3.msra.mxu1 %v3634_v5  ;;  %v562_v19 = vand.u32 4294901760, %v3959_v56  ;;  %v553_v33 = vsub.f32 %v3946_v52, %v552_v1 }
  0x38   : > { %2962 = vmatmul.mubr.f32.gmra.mxu1 %v3805_v23  ;;  %2985 = vmatprep.subr.mxu0 %v3682_v21  ;;  %v544_v34 = vand.u32 4294901760, %v543_v36 }
  0x39   : > { %2930 = vmatprep.mubr.f32.mxu0 %v514_v54  ;;  %2964 = vmatprep.mubr.f32.mxu1 %v3826_v48  ;;  %v563_v32 = vsub.f32 %v3959_v56, %v562_v19  ;;  %v554_v55 = vand.u32 4294901760, %v553_v33 }
  0x3a   : > { %2986 = vmatpush3.msra.mxu0 %v3682_v21  ;;  %3025 = vmatprep.subr.mxu1 %v3645_v9 }
  0x3b   : > { %2931 = vmatmul.mubr.f32.gmra.mxu0 %v524_v58  ;;  %3026 = vmatpush3.msra.mxu1 %v3645_v9  ;;  %v564_v21 = vand.u32 4294901760, %v563_v32 }
  0x3c   : > { %2965 = vmatmul.mubr.f32.gmra.mxu1 %v3828_v49  ;;  %2987 = vmatprep.subr.mxu0 %v3705_v30 }
  0x3d   : > { %2933 = vmatprep.mubr.f32.mxu0 %v534_v18  ;;  %2967 = vmatprep.mubr.f32.mxu1 %v3856_v13 }
  0x3e   : > { %2988 = vmatpush3.msra.mxu0 %v3705_v30  ;;  %3027 = vmatprep.subr.mxu1 %v3647_v10  ;;  %v4794_v30 = vand.u32 4294901760, %v3718_v35 }
  0x3f   : > { %2934 = vmatmul.mubr.f32.gmra.mxu0 %v544_v34  ;;  %3028 = vmatpush3.msra.mxu1 %v3647_v10 }
  0x40   : > { %2968 = vmatmul.mubr.f32.gmra.mxu1 %v3865_v41  ;;  %2989 = vmatprep.subr.mxu0 %v3708_v31 }
  0x41   : > { %2936 = vmatprep.mubr.f32.mxu0 %v554_v55  ;;  %2970 = vmatprep.mubr.f32.mxu1 %v3890_v2 }
  0x42   : > { %2990 = vmatpush3.msra.mxu0 %v3708_v31  ;;  %3029 = vmatprep.subr.mxu1 %v3649_v11  ;;  %v4795_v31 = vand.u32 4294901760, %v3724_v37 }
  0x43   : > { %2937 = vmatmul.mubr.f32.gmra.mxu0 %v564_v21  ;;  %2991 = vmatprep.subr.mxu0 %v3754_v53 }
  0x44   : > { %2971 = vmatmul.mubr.f32.gmra.mxu1 %v3892_v8  ;;  %2992 = vmatpush3.msra.mxu0 %v3754_v53  ;;  %v4796_v53 = vand.u32 4294901760, %v3788_v6 }
  0x45   : > { %3030 = vmatpush3.msra.mxu1 %v3649_v11  ;;  %2993 = vmatprep.subr.mxu0 %v3778_v63 }
  0x46   : > { %2973 = vmatprep.mubr.f32.mxu1 %v3900_v43  ;;  %2994 = vmatpush3.msra.mxu0 %v3778_v63 }
  0x47   : > { %2995 = vmatprep.mubr.f32.mxu0 %v3718_v35  ;;  %3031 = vmatprep.subr.mxu1 %v3669_v17  ;;  %v4805_v35 = vand.u32 4294901760, %v3909_v22 }
  0x48   : > { %2974 = vmatmul.mubr.f32.gmra.mxu1 %v3923_v51  ;;  %2996 = vmatmul.mubr.f32.vlgmr.msra.gmra.mxu0 %v3724_v37 }
  0x49   : > { %3032 = vmatpush3.msra.mxu1 %v3669_v17  ;;  %2976 = vmatprep.mubr.f32.mxu1 %v3929_v47 }
  0x4a   : > { %2998 = vmatprep.mubr.f32.mxu0 %v3788_v6  ;;  %3033 = vmatprep.subr.mxu1 %v3679_v20 }
  0x4b   : > { %3034 = vmatpush3.msra.mxu1 %v3679_v20  ;;  %3059 = vmatprep.subr.mxu0 %v3688_v24 }
  0x4c   : > { %2977 = vmatmul.mubr.f32.gmra.mxu1 %v3948_v40  ;;  %2999 = vmatmul.mubr.f32.gmra.mxu0 %v3794_v12 }
  0x4d   : > { %3001 = vmatprep.mubr.f32.mxu0 %v3817_v42  ;;  %3035 = vmatprep.mubr.f32.mxu1 %v4794_v30 }
  0x4e   : > { %3060 = vmatpush3.msra.mxu0 %v3688_v24  ;;  %3099 = vmatprep.subr.mxu1 %v3630_v3  ;;  %v4797_v24 = vand.u32 4294901760, %v3794_v12 }
  0x4f   : > { %3061 = vmatprep.subr.mxu0 %v3691_v25 }
  0x50   : > { %3002 = vmatmul.mubr.f32.gmra.mxu0 %v3824_v44  ;;  %3036 = vmatmul.mubr.f32.vlgmr.msra.gmra.mxu1 %v4795_v31 }
  0x51   : > { %3100 = vmatpush3.msra.mxu1 %v3630_v3  ;;  %3004 = vmatprep.mubr.f32.mxu0 %v3841_v0  ;;  %v4798_v3 = vand.u32 4294901760, %v3817_v42 }
  0x52   : > { %3038 = vmatprep.mubr.f32.mxu1 %v4796_v53  ;;  %3062 = vmatpush3.msra.mxu0 %v3691_v25  ;;  %v4799_v25 = vand.u32 4294901760, %v3824_v44 }
  0x53   : > { %3101 = vmatprep.subr.mxu1 %v3632_v4  ;;  %3063 = vmatprep.subr.mxu0 %v3694_v26 }
  0x54   : > { %3005 = vmatmul.mubr.f32.gmra.mxu0 %v3844_v46  ;;  %3039 = vmatmul.mubr.f32.gmra.mxu1 %v4797_v24 }
  0x55   : > { %3102 = vmatpush3.msra.mxu1 %v3632_v4  ;;  %3007 = vmatprep.mubr.f32.mxu0 %v3872_v50  ;;  %v4800_v4 = vand.u32 4294901760, %v3841_v0 }
  0x56   : > { %3041 = vmatprep.mubr.f32.mxu1 %v4798_v3  ;;  %3064 = vmatpush3.msra.mxu0 %v3694_v26  ;;  %v4801_v26 = vand.u32 4294901760, %v3844_v46 }
  0x57   : > { %3103 = vmatprep.subr.mxu1 %v3634_v5  ;;  %3065 = vmatprep.subr.mxu0 %v3700_v28 }
  0x58   : > { %3008 = vmatmul.mubr.f32.gmra.mxu0 %v3884_v7  ;;  %3042 = vmatmul.mubr.f32.gmra.mxu1 %v4799_v25 }
  0x59   : > { %3104 = vmatpush3.msra.mxu1 %v3634_v5  ;;  %3010 = vmatprep.mubr.f32.mxu0 %v3906_v15  ;;  %v4802_v5 = vand.u32 4294901760, %v3872_v50 }
  0x5a   : > { %3044 = vmatprep.mubr.f32.mxu1 %v4800_v4  ;;  %3066 = vmatpush3.msra.mxu0 %v3700_v28  ;;  %v4803_v28 = vand.u32 4294901760, %v3884_v7 }
  0x5b   : > { %3105 = vmatprep.subr.mxu1 %v3645_v9  ;;  %3067 = vmatprep.subr.mxu0 %v3727_v38 }
  0x5c   : > { %3011 = vmatmul.mubr.f32.gmra.mxu0 %v3909_v22  ;;  %3045 = vmatmul.mubr.f32.gmra.mxu1 %v4801_v26 }
  0x5d   : > { %3106 = vmatpush3.msra.mxu1 %v3645_v9  ;;  %3013 = vmatprep.mubr.f32.mxu0 %v3921_v60  ;;  %v4804_v9 = vand.u32 4294901760, %v3906_v15 }
  0x5e   : > { %3047 = vmatprep.mubr.f32.mxu1 %v4802_v5  ;;  %3068 = vmatpush3.msra.mxu0 %v3727_v38 }
  0x5f   : > { %3107 = vmatprep.subr.mxu1 %v3647_v10  ;;  %3069 = vmatprep.subr.mxu0 %v3730_v39 }
  0x60   : > { %3014 = vmatmul.mubr.f32.gmra.mxu0 %v3935_v45  ;;  %3048 = vmatmul.mubr.f32.gmra.mxu1 %v4803_v28 }
  0x61   : > { %3108 = vmatpush3.msra.mxu1 %v3647_v10  ;;  %3016 = vmatprep.mubr.f32.mxu0 %v3946_v52  ;;  %v4806_v10 = vmov %v4793_v16 }
  0x62   : > { %3050 = vmatprep.mubr.f32.mxu1 %v4804_v9  ;;  %3070 = vmatpush3.msra.mxu0 %v3730_v39 }
  0x63   : > { %3071 = vmatprep.subr.mxu0 %v3774_v62  ;;  %3109 = vmatprep.subr.mxu1 %v3649_v11 }
  0x64   : > { %3017 = vmatmul.mubr.f32.gmra.mxu0 %v3959_v56  ;;  %3051 = vmatmul.mubr.f32.gmra.mxu1 %v4805_v35 }
  0x65   : > { %3072 = vmatpush3.msra.mxu0 %v3774_v62  ;;  %3110 = vmatpush3.msra.mxu1 %v3649_v11  ;;  %v4807_v11 = vld [vmem:[#allocation5_spill] sm:$0xff] }
  0x66   : > { %3073 = vmatprep.subr.mxu0 %v3799_v14  ;;  %3053 = vmatprep.mubr.f32.mxu1 %v4806_v10 }
  0x67   : > { %3074 = vmatpush3.msra.mxu0 %v3799_v14  ;;  %3075 = vmatprep.mubr.f32.mxu0 %v3696_v27 }
  0x68   : > { %3054 = vmatmul.mubr.f32.gmra.mxu1 %v542_v57  ;;  %3076 = vmatmul.mubr.f32.vlgmr.msra.gmra.mxu0 %v3702_v29 }
  0x69   : > { %3111 = vmatprep.subr.mxu1 %v3669_v17  ;;  %3056 = vmatprep.mubr.f32.mxu1 %v552_v1 }
  0x6a   : > { %3112 = vmatpush3.msra.mxu1 %v3669_v17  ;;  %3078 = vmatprep.mubr.f32.mxu0 %v3768_v59 }
  0x6b   : > { %3113 = vmatprep.subr.mxu1 %v3679_v20 }
  0x6c   : > { %3057 = vmatmul.mubr.f32.gmra.mxu1 %v562_v19  ;;  %3079 = vmatmul.mubr.f32.gmra.mxu0 %v3771_v61 }
  0x6d   : > { %3114 = vmatpush3.msra.mxu1 %v3679_v20  ;;  %3081 = vmatprep.mubr.f32.mxu0 %v4807_v11  ;;  %v1527_v20 = vld [vmem:[%s4121_s7] sm:$0xff] }
  0x6e   : > { %3115 = vmatprep.mubr.f32.mxu1 %v3696_v27  ;;  %v4124_v27 = vand.u32 4294901760, %v1527_v20 }
  0x70   : > { %3082 = vmatmul.mubr.f32.gmra.mxu0 %v3805_v23  ;;  %3116 = vmatmul.mubr.f32.vlgmr.msra.gmra.mxu1 %v3702_v29  ;;  %4808 = vst [vmem:[#allocation5_spill] sm:$0xff] %v4124_v27  ;;  %v4127_v37 = vsub.f32 %v1527_v20, %v4124_v27 }
  0x71   : > { %3084 = vmatprep.mubr.f32.mxu0 %v3826_v48  ;;  %3118 = vmatprep.mubr.f32.mxu1 %v3768_v59 }
  0x72   : > { %4809 = vst [vmem:[#allocation6_spill] sm:$0xff] %v4127_v37  ;;  %v4782_v39 = vand.u32 4294901760, %v4127_v37 }
  0x74   : > { %3085 = vmatmul.mubr.f32.gmra.mxu0 %v3828_v49  ;;  %3119 = vmatmul.mubr.f32.gmra.mxu1 %v3771_v61 }
  0x75   : > { %3087 = vmatprep.mubr.f32.mxu0 %v3856_v13  ;;  %3121 = vmatprep.mubr.f32.mxu1 %v4807_v11 }
  0x78   : > { %3088 = vmatmul.mubr.f32.gmra.mxu0 %v3865_v41  ;;  %3122 = vmatmul.mubr.f32.gmra.mxu1 %v3805_v23 }
  0x79   : > { %3090 = vmatprep.mubr.f32.mxu0 %v3890_v2  ;;  %3124 = vmatprep.mubr.f32.mxu1 %v3826_v48 }
  0x7c   : > { %3091 = vmatmul.mubr.f32.gmra.mxu0 %v3892_v8  ;;  %3125 = vmatmul.mubr.f32.gmra.mxu1 %v3828_v49 }
  0x7d   : > { %3093 = vmatprep.mubr.f32.mxu0 %v3900_v43  ;;  %3127 = vmatprep.mubr.f32.mxu1 %v3856_v13 }
  0x80   : > { %3094 = vmatmul.mubr.f32.gmra.mxu0 %v3923_v51  ;;  %3128 = vmatmul.mubr.f32.gmra.mxu1 %v3865_v41 }
  0x81   : > { %3096 = vmatprep.mubr.f32.mxu0 %v3929_v47  ;;  %3130 = vmatprep.mubr.f32.mxu1 %v3890_v2 }
  0x84   : > { %3097 = vmatmul.mubr.f32.gmra.mxu0 %v3948_v40  ;;  %3131 = vmatmul.mubr.f32.gmra.mxu1 %v3892_v8 }
  0x85   : > { %3133 = vmatprep.mubr.f32.mxu1 %v3900_v43 }
  0x88   : > { %3134 = vmatmul.mubr.f32.gmra.mxu1 %v3923_v51 }
  0x89   : > { %3136 = vmatprep.mubr.f32.mxu1 %v3929_v47  ;;  %v1619_v47 = vsub.f32 %v4127_v37, %v4782_v39 }
  0x8b   : > { %v1620_v62 = vand.u32 4294901760, %v1619_v47 }
  0x8c   : > { %3137 = vmatmul.mubr.f32.gmra.mxu1 %v3948_v40 }
  0x8d   : > { %3215 = vmatprep.mubr.f32.mxu1 %v4124_v27  ;;  %3171 = vmatprep.mubr.f32.mxu0 %v1620_v62 }
  0xe7   : > { %v2917_v17 = vpop.f32.mrf.mxu0 }
  0xe9   : > { %v416_v29 = vpop.f32.mrf.mxu0 }
  0xeb   : > { %v2920_v38 = vpop.f32.mrf.mxu0 }
  0xed   : > { %v436_v45 = vpop.f32.mrf.mxu0 }
  0xef   : > { %v2923_v59 = vpop.f32.mrf.mxu0 }
  0xf0   : > { %v2957_v61 = vpop.f32.mrf.mxu1 }
  0xf1   : > { %v684_v63 = vadd.f32 %v2957_v61, %v2917_v17  ;;  %v456_v6 = vpop.f32.mrf.mxu0 }
  0xf2   : > { %v677_v12 = vpop.f32.mrf.mxu1 }
  0xf3   : > { %v678_v14 = vadd.f32 %v677_v12, %v416_v29  ;;  %v2926_v19 = vpop.f32.mrf.mxu0 }
  0xf4   : > { %v2960_v22 = vpop.f32.mrf.mxu1 }
  0xf5   : > { %v696_v23 = vadd.f32 %v2960_v22, %v2920_v38  ;;  %v476_v42 = vpop.f32.mrf.mxu0 }
  0xf6   : > { %v689_v44 = vpop.f32.mrf.mxu1 }
  0xf7   : > { %v690_v48 = vadd.f32 %v689_v44, %v436_v45  ;;  %v2929_v49 = vpop.f32.mrf.mxu0 }
  0xf8   : > { %v2963_v0 = vpop.f32.mrf.mxu1 }
  0xf9   : > { %v708_v46 = vadd.f32 %v2963_v0, %v2923_v59  ;;  %v496_v13 = vpop.f32.mrf.mxu0 }
  0xfa   : > { %v701_v41 = vpop.f32.mrf.mxu1 }
  0xfb   : > { %v702_v50 = vadd.f32 %v701_v41, %v456_v6  ;;  %v2932_v7 = vpop.f32.mrf.mxu0 }
  0xfc   : > { %v2966_v1 = vpop.f32.mrf.mxu1 }
  0xfd   : > { %v4134_v2 = vadd.f32 %v2966_v1, %v2926_v19  ;;  %v516_v8 = vpop.f32.mrf.mxu0 }
  0xfe   : > { %v713_v40 = vpop.f32.mrf.mxu1 }
  0xff   : > { %v4136_v43 = vadd.f32 %v713_v40, %v476_v42  ;;  %v2935_v15 = vpop.f32.mrf.mxu0 }
 0x100   : > { %v2969_v60 = vpop.f32.mrf.mxu1 }
 0x101   : > { %v4138_v51 = vadd.f32 %v2969_v60, %v2929_v49  ;;  %v536_v52 = vpop.f32.mrf.mxu0 }
 0x102   : > { %v725_v57 = vpop.f32.mrf.mxu1 }
 0x103   : > { %v4140_v54 = vadd.f32 %v725_v57, %v496_v13  ;;  %v4142_v16 = vpop.f32.mrf.mxu0 }
 0x104   : > { %v2972_v56 = vpop.f32.mrf.mxu1 }
 0x105   : > { %v4144_v58 = vadd.f32 %v2972_v56, %v2932_v7  ;;  %v4146_v36 = vpop.f32.mrf.mxu0 }
 0x106   : > { %v737_v18 = vpop.f32.mrf.mxu1 }
 0x107   : > { %v4148_v33 = vadd.f32 %v737_v18, %v516_v8 }
 0x108   : > { %v2975_v34 = vpop.f32.mrf.mxu1  ;;  %v2997_v32 = vpop.f32.mrf.mxu0 }
 0x109   : > { %v4150_v55 = vadd.f32 %v2975_v34, %v2935_v15  ;;  %v863_v21 = vadd.f32 %v2997_v32, %v684_v63 }
 0x10a   : > { %v749_v30 = vpop.f32.mrf.mxu1  ;;  %v855_v31 = vpop.f32.mrf.mxu0 }
 0x10b   : > { %v4152_v53 = vadd.f32 %v749_v30, %v536_v52  ;;  %v856_v24 = vadd.f32 %v855_v31, %v678_v14 }
 0x10c   : > { %v4154_v3 = vpop.f32.mrf.mxu1  ;;  %v3000_v25 = vpop.f32.mrf.mxu0 }
 0x10d   : > { %v877_v4 = vadd.f32 %v3000_v25, %v696_v23 }
 0x10e   : > { %v4156_v26 = vpop.f32.mrf.mxu1  ;;  %v869_v5 = vpop.f32.mrf.mxu0 }
 0x10f   : > { %v870_v28 = vadd.f32 %v869_v5, %v690_v48 }
 0x110   : > { %v3003_v9 = vpop.f32.mrf.mxu0  ;;  %v3037_v35 = vpop.f32.mrf.mxu1 }
 0x111   : > { %v891_v10 = vadd.f32 %v3003_v9, %v708_v46  ;;  %v4158_v11 = vadd.f32 %v3037_v35, %v863_v21 }
 0x112   : > { %v883_v17 = vpop.f32.mrf.mxu0  ;;  %v1041_v20 = vpop.f32.mrf.mxu1 }
 0x113   : > { %4810 = vst [vmem:[#allocation7_spill] sm:$0xff] %v4158_v11  ;;  %v884_v29 = vadd.f32 %v883_v17, %v702_v50  ;;  %v4160_v38 = vadd.f32 %v1041_v20, %v856_v24 }
 0x114   : > { %v4162_v45 = vpop.f32.mrf.mxu0  ;;  %v3040_v47 = vpop.f32.mrf.mxu1 }
 0x115   : > { %4811 = vst [vmem:[#allocation8_spill] sm:$0xff] %v4160_v38  ;;  %v4164_v59 = vadd.f32 %v3040_v47, %v877_v4 }
 0x116   : > { %v4166_v61 = vpop.f32.mrf.mxu0  ;;  %v1057_v62 = vpop.f32.mrf.mxu1 }
 0x117   : > { %v4168_v63 = vadd.f32 %v1057_v62, %v870_v28 }
 0x118   : > { %v3009_v6 = vpop.f32.mrf.mxu0  ;;  %v3043_v12 = vpop.f32.mrf.mxu1 }
 0x119   : > { %4812 = vst [vmem:[#allocation9_spill] sm:$0xff] %v4168_v63  ;;  %v4170_v14 = vadd.f32 %v3043_v12, %v891_v10 }
 0x11a   : > { %v4172_v19 = vpop.f32.mrf.mxu0  ;;  %v1073_v22 = vpop.f32.mrf.mxu1 }
 0x11b   : > { %v4174_v23 = vadd.f32 %v1073_v22, %v884_v29 }
 0x11c   : > { %v3012_v42 = vpop.f32.mrf.mxu0  ;;  %v4176_v44 = vpop.f32.mrf.mxu1 }
 0x11e   : > { %v925_v48 = vpop.f32.mrf.mxu0  ;;  %v4178_v49 = vpop.f32.mrf.mxu1 }
 0x120   : > { %v3015_v0 = vpop.f32.mrf.mxu0  ;;  %v3049_v46 = vpop.f32.mrf.mxu1 }
 0x121   : > { %v947_v27 = vadd.f32 %v3015_v0, %v4150_v55  ;;  %v919_v0 = vadd.f32 %v3009_v6, %v4138_v51  ;;  %v905_v6 = vadd.f32 %v4162_v45, %v4134_v2 }
 0x122   : > { %v939_v13 = vpop.f32.mrf.mxu0  ;;  %v4180_v41 = vpop.f32.mrf.mxu1 }
 0x124   : > { %v3018_v50 = vpop.f32.mrf.mxu0  ;;  %v3052_v7 = vpop.f32.mrf.mxu1 }
 0x126   : > { %v953_v1 = vpop.f32.mrf.mxu0  ;;  %v1121_v8 = vpop.f32.mrf.mxu1 }
 0x128   : > { %v3055_v40 = vpop.f32.mrf.mxu1  ;;  %v4182_v15 = vpop.f32.mrf.mxu0 }
 0x129   : > { %4813 = vst [vmem:[#allocation10_spill] sm:$0xff] %v4182_v15  ;;  %v1146_v38 = vadd.f32 %v3055_v40, %v947_v27  ;;  %v926_v15 = vadd.f32 %v925_v48, %v4148_v33 }
 0x12a   : > { %v1137_v60 = vpop.f32.mrf.mxu1  ;;  %v4184_v52 = vpop.f32.mrf.mxu0 }
 0x12b   : > { %4814 = vst [vmem:[#allocation11_spill] sm:$0xff] %v4184_v52  ;;  %v940_v52 = vadd.f32 %v939_v13, %v4152_v53 }
 0x12c   : > { %v3058_v57 = vpop.f32.mrf.mxu1  ;;  %v4186_v56 = vpop.f32.mrf.mxu0 }
 0x12d   : > { %4815 = vst [vmem:[#allocation12_spill] sm:$0xff] %v4186_v56 }
 0x12e   : > { %v1153_v18 = vpop.f32.mrf.mxu1  ;;  %v4188_v34 = vpop.f32.mrf.mxu0 }
 0x12f   : > { %4816 = vst [vmem:[#allocation13_spill] sm:$0xff] %v4188_v34 }
 0x130   : > { %v4190_v32 = vpop.f32.mrf.mxu0  ;;  %v4192_v21 = vpop.f32.mrf.mxu1 }
 0x131   : > { %4817 = vst [vmem:[#allocation14_spill] sm:$0xff] %v4192_v21  ;;  %v933_v21 = vadd.f32 %v3012_v42, %v4144_v58 }
 0x132   : > { %v4194_v30 = vpop.f32.mrf.mxu0  ;;  %v4196_v31 = vpop.f32.mrf.mxu1 }
 0x133   : > { %4818 = vst [vmem:[#allocation15_spill] sm:$0xff] %v4196_v31  ;;  %v768_v31 = vadd.f32 %v4154_v3, %v4142_v16  ;;  %v1130_v63 = vadd.f32 %v3052_v7, %v933_v21  ;;  %v1122_v16 = vadd.f32 %v1121_v8, %v926_v15 }
 0x134   : > { %v4198_v24 = vpop.f32.mrf.mxu0  ;;  %v4200_v25 = vpop.f32.mrf.mxu1 }
 0x135   : > { %4819 = vst [vmem:[#allocation16_spill] sm:$0xff] %v4200_v25  ;;  %v961_v34 = vadd.f32 %v3018_v50, %v768_v31 }
 0x136   : > { %v4202_v4 = vpop.f32.mrf.mxu0  ;;  %v4204_v5 = vpop.f32.mrf.mxu1 }
 0x137   : > { %4820 = vst [vmem:[#allocation17_spill] sm:$0xff] %v4204_v5  ;;  %v762_v5 = vadd.f32 %v4156_v26, %v4146_v36  ;;  %v1162_v58 = vadd.f32 %v3058_v57, %v961_v34  ;;  %v912_v36 = vadd.f32 %v4172_v19, %v4140_v54  ;;  %v1114_v26 = vadd.f32 %v3049_v46, %v919_v0 }
 0x138   : > { %v3089_v28 = vpop.f32.mrf.mxu0  ;;  %v4206_v9 = vpop.f32.mrf.mxu1  ;;  %v898_v46 = vadd.f32 %v4166_v61, %v4136_v43 }
 0x139   : > { %v954_v56 = vadd.f32 %v953_v1, %v762_v5  ;;  %v1311_v1 = vadd.f32 %v3089_v28, %v1114_v26 }
 0x13a   : > { %v1304_v35 = vpop.f32.mrf.mxu0  ;;  %v4208_v10 = vpop.f32.mrf.mxu1 }
 0x13b   : > { %4821 = vst [vmem:[#allocation18_spill] sm:$0xff] %v4208_v10  ;;  %v1138_v10 = vadd.f32 %v1137_v60, %v940_v52  ;;  %v1154_v33 = vadd.f32 %v1153_v18, %v954_v56  ;;  %v1090_v18 = vadd.f32 %v4178_v49, %v898_v46 }
 0x13c   : > { %v3092_v17 = vpop.f32.mrf.mxu0  ;;  %v4210_v20 = vpop.f32.mrf.mxu1 }
 0x13d   : > { %v1323_v42 = vadd.f32 %v3092_v17, %v1130_v63  ;;  %v1106_v63 = vadd.f32 %v4180_v41, %v912_v36 }
 0x13e   : > { %v1316_v29 = vpop.f32.mrf.mxu0  ;;  %v4212_v47 = vpop.f32.mrf.mxu1 }
 0x13f   : > { %v1317_v48 = vadd.f32 %v1316_v29, %v1122_v16 }
 0x140   : > { %v3095_v62 = vpop.f32.mrf.mxu0  ;;  %v3129_v12 = vpop.f32.mrf.mxu1 }
 0x141   : > { %v1335_v55 = vadd.f32 %v3095_v62, %v1146_v38  ;;  %v1480_v52 = vadd.f32 %v3129_v12, %v1311_v1  ;;  %v1528_v1 = vld [vmem:[%s4121_s7 + $0x8] sm:$0xff] }
 0x142   : > { %v1328_v22 = vpop.f32.mrf.mxu0  ;;  %v1473_v39 = vpop.f32.mrf.mxu1 }
 0x143   : > { %v1329_v53 = vadd.f32 %v1328_v22, %v1138_v10  ;;  %v4257_v49 = vand.u32 4294901760, %v1480_v52 }
 0x144   : > { %v3132_v37 = vpop.f32.mrf.mxu1  ;;  %v3098_v11 = vpop.f32.mrf.mxu0 }
 0x145   : > { %v1347_v7 = vadd.f32 %v3098_v11, %v1162_v58  ;;  %v1492_v40 = vadd.f32 %v3132_v37, %v1323_v42  ;;  %v1098_v37 = vadd.f32 %v4176_v44, %v905_v6  ;;  %v1305_v11 = vadd.f32 %v1304_v35, %v1106_v63 }
 0x146   : > { %v1485_v25 = vpop.f32.mrf.mxu1  ;;  %v1340_v13 = vpop.f32.mrf.mxu0  ;;  %v4297_v22 = vsub.f32 %v1480_v52, %v4257_v49 }
 0x147   : > { %v1341_v15 = vadd.f32 %v1340_v13, %v1154_v33  ;;  %v1486_v60 = vadd.f32 %v1485_v25, %v1317_v48  ;;  %v4235_v56 = vand.u32 4294901760, %v1492_v40  ;;  %v1299_v34 = vadd.f32 %v4198_v24, %v1098_v37  ;;  %v4825_v33 = vld [vmem:[#allocation13_spill] sm:$0xff]  ;;  %v4826_v13 = vld [vmem:[#allocation16_spill] sm:$0xff] }
 0x148   : > { %v3135_v3 = vpop.f32.mrf.mxu1  ;;  %v1474_v21 = vadd.f32 %v1473_v39, %v1305_v11  ;;  %v1293_v25 = vadd.f32 %v4202_v4, %v1090_v18  ;;  %v1287_v4 = vadd.f32 %v4190_v32, %v4170_v14  ;;  %v1281_v14 = vadd.f32 %v4194_v30, %v4174_v23  ;;  %v4822_v30 = vld [vmem:[#allocation12_spill] sm:$0xff] }
 0x149   : > { %v1504_v27 = vadd.f32 %v3135_v3, %v1335_v55  ;;  %v4244_v31 = vand.u32 4294901760, %v1486_v60  ;;  %v1468_v5 = vadd.f32 %v4210_v20, %v1299_v34  ;;  %v4261_v39 = vsub.f32 %v1492_v40, %v4235_v56  ;;  %v4823_v3 = vld [vmem:[#allocation18_spill] sm:$0xff]  ;;  %v4830_v18 = vld [vmem:[#allocation8_spill] sm:$0xff]  ;;  %v4831_v34 = vld [vmem:[#allocation11_spill] sm:$0xff] }
 0x14a   : > { %v1497_v50 = vpop.f32.mrf.mxu1  ;;  %v1462_v10 = vadd.f32 %v4212_v47, %v1293_v25  ;;  %v4276_v17 = vand.u32 4294901760, %v1474_v21  ;;  %v1456_v32 = vadd.f32 %v4206_v9, %v1287_v4  ;;  %v1275_v9 = vadd.f32 %v4822_v30, %v4164_v59  ;;  %v4824_v59 = vld [vmem:[#allocation9_spill] sm:$0xff]  ;;  %v4832_v25 = vld [vmem:[#allocation14_spill] sm:$0xff] }
 0x14b   : > { %v4225_v38 = vand.u32 4294901760, %v1504_v27  ;;  %v1498_v51 = vadd.f32 %v1497_v50, %v1329_v53  ;;  %v4280_v20 = vsub.f32 %v1486_v60, %v4244_v31  ;;  %v4294_v47 = vand.u32 4294901760, %v1468_v5 }
 0x14c   : > { %v3138_v8 = vpop.f32.mrf.mxu1  ;;  %v4306_v23 = vand.u32 4294901760, %v4261_v39  ;;  %v1450_v58 = vadd.f32 %v4823_v3, %v1281_v14  ;;  %v4311_v42 = vand.u32 4294901760, %v1462_v10  ;;  %v4315_v53 = vsub.f32 %v1474_v21, %v4276_v17 }
 0x14d   : > { %v4230_v54 = vand.u32 4294901760, %v1498_v51  ;;  %v1516_v19 = vadd.f32 %v3138_v8, %v1347_v7  ;;  %v4238_v2 = vsub.f32 %v1504_v27, %v4225_v38  ;;  %v4321_v26 = vand.u32 4294901760, %v4280_v20  ;;  %v4827_v8 = vld [vmem:[#allocation7_spill] sm:$0xff] }
 0x14e   : > { %v1509_v57 = vpop.f32.mrf.mxu1  ;;  %v1269_v48 = vadd.f32 %v4825_v33, %v4824_v59  ;;  %v1444_v50 = vadd.f32 %v4826_v13, %v1275_v9  ;;  %v4326_v7 = vand.u32 4294901760, %v1456_v32  ;;  %v4330_v40 = vsub.f32 %v1468_v5, %v4294_v47 }
 0x14f   : > { %v4240_v45 = vand.u32 4294901760, %v1516_v19  ;;  %v1510_v41 = vadd.f32 %v1509_v57, %v1341_v15  ;;  %v4247_v43 = vsub.f32 %v1498_v51, %v4230_v54  ;;  %v4271_v35 = vand.u32 4294901760, %v4238_v2  ;;  %v4828_v15 = vld [vmem:[#allocation10_spill] sm:$0xff] }
 0x150   : > { %v1728_v6 = vsub.f32 %v4261_v39, %v4306_v23  ;;  %v4336_v63 = vand.u32 4294901760, %v4297_v22  ;;  %v1263_v60 = vadd.f32 %v4828_v15, %v4827_v8  ;;  %v4342_v37 = vand.u32 4294901760, %v1450_v58 }
 0x151   : > { %v4250_v61 = vsub.f32 %v1516_v19, %v4240_v45  ;;  %v4252_v44 = vand.u32 4294901760, %v1510_v41  ;;  %3139 = vmatprep.subr.mxu0 %v4240_v45  ;;  %v4289_v12 = vand.u32 4294901760, %v4247_v43  ;;  %v1714_v16 = vsub.f32 %v4238_v2, %v4271_v35  ;;  %v4829_v19 = vld [vmem:[#allocation17_spill] sm:$0xff] }
 0x152   : > { %3140 = vmatpush3.msra.mxu0 %v4240_v45  ;;  %v1438_v46 = vadd.f32 %v4829_v19, %v1269_v48  ;;  %v4346_v11 = vsub.f32 %v1462_v10, %v4311_v42  ;;  %v1735_v57 = vsub.f32 %v4280_v20, %v4321_v26  ;;  %v1257_v21 = vadd.f32 %v4831_v34, %v4830_v18 }
 0x153   : > { %v4264_v24 = vsub.f32 %v1510_v41, %v4252_v44  ;;  %3141 = vmatprep.subr.mxu0 %v4252_v44  ;;  %v4268_v28 = vand.u32 4294901760, %v4250_v61  ;;  %v1721_v36 = vsub.f32 %v4247_v43, %v4289_v12  ;;  %v1715_v51 = vand.u32 4294901760, %v1714_v16  ;;  %v4833_v16 = vld [vmem:[#allocation15_spill] sm:$0xff] }
 0x154   : > { %3142 = vmatpush3.msra.mxu0 %v4252_v44  ;;  %v4352_v41 = vand.u32 4294901760, %v4315_v53  ;;  %v1432_v5 = vadd.f32 %v4832_v25, %v1263_v60  ;;  %v4357_v4 = vand.u32 4294901760, %v1444_v50  ;;  %v4360_v10 = vand.u32 4294901760, %v1528_v1 }
 0x155   : > { %3143 = vmatprep.subr.mxu0 %v4225_v38  ;;  %v1700_v29 = vsub.f32 %v4250_v61, %v4268_v28  ;;  %v4286_v62 = vand.u32 4294901760, %v4264_v24  ;;  %v1722_v52 = vand.u32 4294901760, %v1721_v36  ;;  %v1729_v14 = vand.u32 4294901760, %v1728_v6 }
 0x156   : > { %3144 = vmatpush3.msra.mxu0 %v4225_v38  ;;  %v1426_v30 = vadd.f32 %v4833_v16, %v1257_v21  ;;  %v4372_v9 = vand.u32 4294901760, %v1438_v46  ;;  %v1736_v3 = vand.u32 4294901760, %v1735_v57  ;;  %v4382_v36 = vand.u32 4294901760, %v4346_v11 }
 0x157   : > { %3145 = vmatprep.subr.mxu0 %v4230_v54  ;;  %v1701_v55 = vand.u32 4294901760, %v1700_v29  ;;  %v1707_v0 = vsub.f32 %v4264_v24, %v4286_v62  ;;  %v4363_v29 = vsub.f32 %v1456_v32, %v4326_v7  ;;  %v4376_v32 = vsub.f32 %v1450_v58, %v4342_v37 }
 0x158   : > { %3146 = vmatpush3.msra.mxu0 %v4230_v54  ;;  %v4384_v59 = vand.u32 4294901760, %v1432_v5  ;;  %v4388_v33 = vsub.f32 %v1528_v1, %v4360_v10  ;;  %v4391_v58 = vsub.f32 %v1444_v50, %v4357_v4  ;;  %v4399_v6 = vand.u32 4294901760, %v1426_v30 }
 0x159   : > { %3147 = vmatprep.subr.mxu0 %v4235_v56  ;;  %3183 = vmatprep.subr.mxu1 %v1701_v55  ;;  %v1708_v27 = vand.u32 4294901760, %v1707_v0  ;;  %v4369_v0 = vand.u32 4294901760, %v4330_v40  ;;  %v4403_v1 = vsub.f32 %v1438_v46, %v4372_v9  ;;  %v1763_v8 = vsub.f32 %v4346_v11, %v4382_v36 }
 0x15a   : > { %3148 = vmatpush3.msra.mxu0 %v4235_v56  ;;  %3184 = vmatpush3.msra.mxu1 %v1701_v55  ;;  %v1742_v55 = vsub.f32 %v4297_v22, %v4336_v63  ;;  %v4409_v15 = vand.u32 4294901760, %v4376_v32  ;;  %v4787_v60 = vand.u32 4294901760, %v4388_v33  ;;  %v4414_v19 = vsub.f32 %v1432_v5, %v4384_v59 }
 0x15b   : > { %3149 = vmatprep.subr.mxu0 %v4244_v31  ;;  %3185 = vmatprep.subr.mxu1 %v1708_v27  ;;  %v1756_v13 = vsub.f32 %v4330_v40, %v4369_v0  ;;  %v4420_v57 = vand.u32 4294901760, %v4391_v58  ;;  %v4424_v18 = vsub.f32 %v1426_v30, %v4399_v6  ;;  %v1764_v34 = vand.u32 4294901760, %v1763_v8 }
 0x15c   : > { %3150 = vmatpush3.msra.mxu0 %v4244_v31  ;;  %3186 = vmatpush3.msra.mxu1 %v1708_v27  ;;  %v1749_v27 = vsub.f32 %v4315_v53, %v4352_v41  ;;  %v1743_v48 = vand.u32 4294901760, %v1742_v55  ;;  %v1777_v21 = vsub.f32 %v4376_v32, %v4409_v15  ;;  %v4430_v25 = vand.u32 4294901760, %v4403_v1 }
 0x15d   : > { %3151 = vmatprep.subr.mxu0 %v4257_v49  ;;  %3187 = vmatprep.subr.mxu1 %v1715_v51  ;;  %v1757_v46 = vand.u32 4294901760, %v1756_v13  ;;  %v1629_v5 = vsub.f32 %v4388_v33, %v4787_v60  ;;  %v1784_v55 = vsub.f32 %v4391_v58, %v4420_v57  ;;  %v4440_v16 = vand.u32 4294901760, %v4414_v19  ;;  %v1529_v13 = vld [vmem:[%s4121_s7 + $0x10] sm:$0xff] }
 0x15e   : > { %3152 = vmatpush3.msra.mxu0 %v4257_v49  ;;  %3188 = vmatpush3.msra.mxu1 %v1715_v51  ;;  %v4397_v51 = vand.u32 4294901760, %v4363_v29  ;;  %v1750_v50 = vand.u32 4294901760, %v1749_v27  ;;  %v1778_v30 = vand.u32 4294901760, %v1777_v21  ;;  %v4447_v27 = vand.u32 4294901760, %v4424_v18 }
 0x15f   : > { %3153 = vmatprep.subr.mxu0 %v4276_v17  ;;  %3189 = vmatprep.subr.mxu1 %v1722_v52  ;;  %v1798_v8 = vsub.f32 %v4414_v19, %v4440_v16  ;;  %v4459_v21 = vand.u32 4294901760, %v1529_v13 }
 0x160   : > { %3154 = vmatpush3.msra.mxu0 %v4276_v17  ;;  %3190 = vmatpush3.msra.mxu1 %v1722_v52  ;;  %v1770_v52 = vsub.f32 %v4363_v29, %v4397_v51 }
 0x161   : > { %3155 = vmatprep.subr.mxu0 %v4294_v47  ;;  %3191 = vmatprep.subr.mxu1 %v1729_v14  ;;  %v4469_v60 = vsub.f32 %v1529_v13, %v4459_v21  ;;  %v1533_v13 = vld [vmem:[%s4121_s7 + $0x30] sm:$0xff] }
 0x162   : > { %3156 = vmatpush3.msra.mxu0 %v4294_v47  ;;  %3192 = vmatpush3.msra.mxu1 %v1729_v14  ;;  %v1771_v14 = vand.u32 4294901760, %v1770_v52 }
 0x163   : > { %3157 = vmatprep.subr.mxu0 %v4311_v42  ;;  %3193 = vmatprep.subr.mxu1 %v1736_v3 }
 0x164   : > { %3158 = vmatpush3.msra.mxu0 %v4311_v42  ;;  %3194 = vmatpush3.msra.mxu1 %v1736_v3  ;;  %v1791_v3 = vsub.f32 %v4403_v1, %v4430_v25 }
 0x165   : > { %3159 = vmatprep.subr.mxu0 %v4326_v7  ;;  %3195 = vmatprep.subr.mxu1 %v1743_v48 }
 0x166   : > { %3160 = vmatpush3.msra.mxu0 %v4326_v7  ;;  %3196 = vmatpush3.msra.mxu1 %v1743_v48  ;;  %v1630_v48 = vand.u32 4294901760, %v1629_v5  ;;  %v1792_v52 = vand.u32 4294901760, %v1791_v3 }
 0x167   : > { %3161 = vmatprep.subr.mxu0 %v4342_v37  ;;  %3197 = vmatprep.subr.mxu1 %v1750_v50 }
 0x168   : > { %3162 = vmatpush3.msra.mxu0 %v4342_v37  ;;  %3198 = vmatpush3.msra.mxu1 %v1750_v50  ;;  %v1785_v50 = vand.u32 4294901760, %v1784_v55  ;;  %v1531_v55 = vld [vmem:[%s4121_s7 + $0x20] sm:$0xff] }
 0x169   : > { %3163 = vmatprep.subr.mxu0 %v4357_v4  ;;  %3199 = vmatprep.subr.mxu1 %v1757_v46 }
 0x16a   : > { %3164 = vmatpush3.msra.mxu0 %v4357_v4  ;;  %3200 = vmatpush3.msra.mxu1 %v1757_v46  ;;  %v1530_v46 = vld [vmem:[%s4121_s7 + $0x18] sm:$0xff] }
 0x16b   : > { %3165 = vmatprep.subr.mxu0 %v4372_v9  ;;  %3201 = vmatprep.subr.mxu1 %v1764_v34  ;;  %v4461_v5 = vand.u32 4294901760, %v1530_v46 }
 0x16c   : > { %3166 = vmatpush3.msra.mxu0 %v4372_v9  ;;  %3202 = vmatpush3.msra.mxu1 %v1764_v34  ;;  %v1805_v34 = vsub.f32 %v4424_v18, %v4447_v27 }
 0x16d   : > { %3167 = vmatprep.subr.mxu0 %v4384_v59  ;;  %3203 = vmatprep.subr.mxu1 %v1771_v14 }
 0x16e   : > { %3168 = vmatpush3.msra.mxu0 %v4384_v59  ;;  %3204 = vmatpush3.msra.mxu1 %v1771_v14  ;;  %v1799_v14 = vand.u32 4294901760, %v1798_v8  ;;  %v1806_v3 = vand.u32 4294901760, %v1805_v34 }
 0x16f   : > { %3169 = vmatprep.subr.mxu0 %v4399_v6  ;;  %3205 = vmatprep.subr.mxu1 %v1778_v30 }
 0x170   : > { %3170 = vmatpush3.msra.mxu0 %v4399_v6  ;;  %3206 = vmatpush3.msra.mxu1 %v1778_v30  ;;  %v1532_v30 = vld [vmem:[%s4121_s7 + $0x28] sm:$0xff] }
 0x171   : > { %3207 = vmatprep.subr.mxu1 %v1785_v50  ;;  %3227 = vmatprep.subr.mxu0 %v4250_v61 }
 0x172   : > { %3172 = vmatmul.mubr.f32.vlgmr.msra.gmra.mxu0 %v1630_v48  ;;  %3208 = vmatpush3.msra.mxu1 %v1785_v50  ;;  %v4475_v48 = vand.u32 4294901760, %v1531_v55  ;;  %v4478_v50 = vand.u32 4294901760, %v1532_v30 }
 0x173   : > { %3228 = vmatpush3.msra.mxu0 %v4250_v61  ;;  %3209 = vmatprep.subr.mxu1 %v1792_v52  ;;  %v4473_v61 = vsub.f32 %v1530_v46, %v4461_v5  ;;  %v1534_v46 = vld [vmem:[%s4121_s7 + $0x38] sm:$0xff] }
 0x174   : > { %3229 = vmatprep.subr.mxu0 %v4264_v24  ;;  %3210 = vmatpush3.msra.mxu1 %v1792_v52  ;;  %v4499_v52 = vand.u32 4294901760, %v1533_v13 }
 0x175   : > { %3230 = vmatpush3.msra.mxu0 %v4264_v24  ;;  %3211 = vmatprep.subr.mxu1 %v1799_v14  ;;  %v4789_v24 = vand.u32 4294901760, %v4469_v60  ;;  %v4788_v8 = vand.u32 4294901760, %v4473_v61 }
 0x176   : > { %3231 = vmatprep.subr.mxu0 %v4238_v2  ;;  %3212 = vmatpush3.msra.mxu1 %v1799_v14 }
 0x177   : > { %3232 = vmatpush3.msra.mxu0 %v4238_v2  ;;  %3213 = vmatprep.subr.mxu1 %v1806_v3  ;;  %v4489_v2 = vsub.f32 %v1531_v55, %v4475_v48  ;;  %v1639_v34 = vsub.f32 %v4469_v60, %v4789_v24  ;;  %v1649_v14 = vsub.f32 %v4473_v61, %v4788_v8 }
 0x178   : > { %3233 = vmatprep.subr.mxu0 %v4247_v43  ;;  %3214 = vmatpush3.msra.mxu1 %v1806_v3 }
 0x179   : > { %3234 = vmatpush3.msra.mxu0 %v4247_v43  ;;  %3216 = vmatmul.mubr.f32.vlgmr.msra.gmra.mxu1 %v4360_v10  ;;  %v4495_v43 = vsub.f32 %v1532_v30, %v4478_v50  ;;  %v1658_v55 = vand.u32 4294901760, %v4489_v2  ;;  %v4520_v30 = vsub.f32 %v1533_v13, %v4499_v52  ;;  %v1640_v3 = vand.u32 4294901760, %v1639_v34 }
 0x17a   : > { %3235 = vmatprep.subr.mxu0 %v4261_v39  ;;  %3271 = vmatprep.subr.mxu1 %v4240_v45 }
 0x17b   : > { %3236 = vmatpush3.msra.mxu0 %v4261_v39  ;;  %3272 = vmatpush3.msra.mxu1 %v4240_v45  ;;  %v4506_v39 = vand.u32 4294901760, %v1534_v46  ;;  %v1659_v24 = vsub.f32 %v4489_v2, %v1658_v55  ;;  %v1678_v13 = vand.u32 4294901760, %v4520_v30 }
 0x17c   : > { %3237 = vmatprep.subr.mxu0 %v4280_v20  ;;  %3273 = vmatprep.subr.mxu1 %v4252_v44 }
 0x17d   : > { %3238 = vmatpush3.msra.mxu0 %v4280_v20  ;;  %3274 = vmatpush3.msra.mxu1 %v4252_v44  ;;  %v1668_v20 = vand.u32 4294901760, %v4495_v43  ;;  %v4525_v8 = vsub.f32 %v1534_v46, %v4506_v39 }
 0x17e   : > { %3239 = vmatprep.subr.mxu0 %v4297_v22  ;;  %3275 = vmatprep.subr.mxu1 %v4225_v38 }
 0x17f   : > { %3240 = vmatpush3.msra.mxu0 %v4297_v22  ;;  %3276 = vmatpush3.msra.mxu1 %v4225_v38  ;;  %v1650_v22 = vand.u32 4294901760, %v1649_v14  ;;  %v1688_v46 = vand.u32 4294901760, %v4525_v8  ;;  %v1679_v14 = vsub.f32 %v4520_v30, %v1678_v13 }
 0x180   : > { %3241 = vmatprep.subr.mxu0 %v4315_v53  ;;  %3277 = vmatprep.subr.mxu1 %v4230_v54 }
 0x181   : > { %3242 = vmatpush3.msra.mxu0 %v4315_v53  ;;  %3278 = vmatpush3.msra.mxu1 %v4230_v54  ;;  %v1669_v53 = vsub.f32 %v4495_v43, %v1668_v20 }
 0x182   : > { %3243 = vmatprep.subr.mxu0 %v4330_v40  ;;  %3279 = vmatprep.subr.mxu1 %v4235_v56 }
 0x183   : > { %3244 = vmatpush3.msra.mxu0 %v4330_v40  ;;  %3280 = vmatpush3.msra.mxu1 %v4235_v56  ;;  %v1660_v40 = vand.u32 4294901760, %v1659_v24  ;;  %v1670_v34 = vand.u32 4294901760, %v1669_v53 }
 0x184   : > { %3245 = vmatprep.subr.mxu0 %v4346_v11  ;;  %3281 = vmatprep.subr.mxu1 %v4244_v31 }
 0x185   : > { %3174 = vmatprep.mubr.f32.mxu0 %v1640_v3  ;;  %3246 = vmatpush3.msra.mxu0 %v4346_v11  ;;  %v1689_v11 = vsub.f32 %v4525_v8, %v1688_v46 }
 0x186   : > { %3282 = vmatpush3.msra.mxu1 %v4244_v31  ;;  %3175 = vmatmul.mubr.f32.gmra.mxu0 %v1650_v22  ;;  %v2604_v22 = vld [vmem:[%s4766_s3] ss:$0 sm:$0xff] }
 0x187   : > { %3247 = vmatprep.subr.mxu0 %v4363_v29  ;;  %3283 = vmatprep.subr.mxu1 %v4257_v49  ;;  %v1690_v24 = vand.u32 4294901760, %v1689_v11 }
 0x188   : > { %3248 = vmatpush3.msra.mxu0 %v4363_v29  ;;  %3284 = vmatpush3.msra.mxu1 %v4257_v49  ;;  %v1680_v29 = vand.u32 4294901760, %v1679_v14 }
 0x189   : > { %3249 = vmatprep.subr.mxu0 %v4376_v32  ;;  %3285 = vmatprep.subr.mxu1 %v4276_v17 }
 0x18a   : > { %3177 = vmatprep.mubr.f32.mxu0 %v1660_v40  ;;  %3250 = vmatpush3.msra.mxu0 %v4376_v32  ;;  %v4834_v32 = vld [vmem:[#allocation6_spill] sm:$0xff] }
 0x18b   : > { %3286 = vmatpush3.msra.mxu1 %v4276_v17  ;;  %3178 = vmatmul.mubr.f32.gmra.mxu0 %v1670_v34 }
 0x18c   : > { %3251 = vmatprep.subr.mxu0 %v4391_v58  ;;  %3287 = vmatprep.subr.mxu1 %v4294_v47 }
 0x18d   : > { %3218 = vmatprep.mubr.f32.mxu1 %v4459_v21  ;;  %3252 = vmatpush3.msra.mxu0 %v4391_v58 }
 0x18e   : > { %3288 = vmatpush3.msra.mxu1 %v4294_v47  ;;  %3253 = vmatprep.subr.mxu0 %v4403_v1 }
 0x18f   : > { %3219 = vmatmul.mubr.f32.gmra.mxu1 %v4461_v5  ;;  %3289 = vmatprep.subr.mxu1 %v4311_v42 }
 0x190   : > { %3180 = vmatprep.mubr.f32.mxu0 %v1680_v29  ;;  %3254 = vmatpush3.msra.mxu0 %v4403_v1 }
 0x191   : > { %3290 = vmatpush3.msra.mxu1 %v4311_v42  ;;  %3181 = vmatmul.mubr.f32.gmra.mxu0 %v1690_v24 }
 0x192   : > { %3255 = vmatprep.subr.mxu0 %v4414_v19  ;;  %3291 = vmatprep.subr.mxu1 %v4326_v7 }
 0x193   : > { %3221 = vmatprep.mubr.f32.mxu1 %v4475_v48  ;;  %3256 = vmatpush3.msra.mxu0 %v4414_v19 }
 0x194   : > { %3292 = vmatpush3.msra.mxu1 %v4326_v7  ;;  %3257 = vmatprep.subr.mxu0 %v4424_v18 }
 0x195   : > { %3222 = vmatmul.mubr.f32.gmra.mxu1 %v4478_v50  ;;  %3293 = vmatprep.subr.mxu1 %v4342_v37 }
 0x196   : > { %3258 = vmatpush3.msra.mxu0 %v4424_v18  ;;  %3259 = vmatprep.mubr.f32.mxu0 %v4834_v32 }
 0x197   : > { %3294 = vmatpush3.msra.mxu1 %v4342_v37  ;;  %3260 = vmatmul.mubr.f32.vlgmr.msra.gmra.mxu0 %v4388_v33 }
 0x198   : > { %3295 = vmatprep.subr.mxu1 %v4357_v4  ;;  %3315 = vmatprep.subr.mxu0 %v4268_v28 }
 0x199   : > { %3224 = vmatprep.mubr.f32.mxu1 %v4499_v52  ;;  %3296 = vmatpush3.msra.mxu1 %v4357_v4 }
 0x19a   : > { %3316 = vmatpush3.msra.mxu0 %v4268_v28  ;;  %3225 = vmatmul.mubr.f32.gmra.mxu1 %v4506_v39  ;;  %v4835_v28 = vand.u32 4294901760, %v4834_v32 }
 0x19b   : > { %3297 = vmatprep.subr.mxu1 %v4372_v9  ;;  %3317 = vmatprep.subr.mxu0 %v4286_v62 }
 0x19c   : > { %3262 = vmatprep.mubr.f32.mxu0 %v4469_v60  ;;  %3298 = vmatpush3.msra.mxu1 %v4372_v9 }
 0x19d   : > { %3318 = vmatpush3.msra.mxu0 %v4286_v62  ;;  %3299 = vmatprep.subr.mxu1 %v4384_v59  ;;  %v4836_v62 = vand.u32 4294901760, %v4388_v33 }
 0x19e   : > { %3263 = vmatmul.mubr.f32.gmra.mxu0 %v4473_v61  ;;  %3319 = vmatprep.subr.mxu0 %v4271_v35 }
 0x19f   : > { %3300 = vmatpush3.msra.mxu1 %v4384_v59  ;;  %3320 = vmatpush3.msra.mxu0 %v4271_v35  ;;  %v4837_v35 = vand.u32 4294901760, %v4469_v60 }
 0x1a0   : > { %3301 = vmatprep.subr.mxu1 %v4399_v6  ;;  %3321 = vmatprep.subr.mxu0 %v4289_v12 }
 0x1a1   : > { %3265 = vmatprep.mubr.f32.mxu0 %v4489_v2  ;;  %3302 = vmatpush3.msra.mxu1 %v4399_v6 }
 0x1a2   : > { %3303 = vmatprep.mubr.f32.mxu1 %v4835_v28  ;;  %3322 = vmatpush3.msra.mxu0 %v4289_v12  ;;  %v4838_v12 = vand.u32 4294901760, %v4473_v61 }
 0x1a3   : > { %3266 = vmatmul.mubr.f32.gmra.mxu0 %v4495_v43  ;;  %3304 = vmatmul.mubr.f32.vlgmr.msra.gmra.mxu1 %v4836_v62 }
 0x1a4   : > { %3323 = vmatprep.subr.mxu0 %v4306_v23  ;;  %3359 = vmatprep.subr.mxu1 %v4240_v45 }
 0x1a5   : > { %3324 = vmatpush3.msra.mxu0 %v4306_v23  ;;  %3360 = vmatpush3.msra.mxu1 %v4240_v45 }
 0x1a6   : > { %3325 = vmatprep.subr.mxu0 %v4321_v26  ;;  %3361 = vmatprep.subr.mxu1 %v4252_v44 }
 0x1a7   : > { %3268 = vmatprep.mubr.f32.mxu0 %v4520_v30  ;;  %3306 = vmatprep.mubr.f32.mxu1 %v4837_v35 }
 0x1a8   : > { %3326 = vmatpush3.msra.mxu0 %v4321_v26  ;;  %3362 = vmatpush3.msra.mxu1 %v4252_v44 }
 0x1a9   : > { %3269 = vmatmul.mubr.f32.gmra.mxu0 %v4525_v8  ;;  %3307 = vmatmul.mubr.f32.gmra.mxu1 %v4838_v12 }
 0x1aa   : > { %3327 = vmatprep.subr.mxu0 %v4336_v63  ;;  %3363 = vmatprep.subr.mxu1 %v4225_v38 }
 0x1ab   : > { %3328 = vmatpush3.msra.mxu0 %v4336_v63  ;;  %3364 = vmatpush3.msra.mxu1 %v4225_v38  ;;  %v4839_v38 = vld [vmem:[#allocation5_spill] sm:$0xff] }
 0x1ac   : > { %3329 = vmatprep.subr.mxu0 %v4352_v41  ;;  %3365 = vmatprep.subr.mxu1 %v4230_v54 }
 0x1ad   : > { %3309 = vmatprep.mubr.f32.mxu1 %v1658_v55  ;;  %3330 = vmatpush3.msra.mxu0 %v4352_v41 }
 0x1ae   : > { %3366 = vmatpush3.msra.mxu1 %v4230_v54  ;;  %3331 = vmatprep.subr.mxu0 %v4369_v0 }
 0x1af   : > { %3310 = vmatmul.mubr.f32.gmra.mxu1 %v1668_v20  ;;  %3367 = vmatprep.subr.mxu1 %v4235_v56 }
 0x1b0   : > { %3332 = vmatpush3.msra.mxu0 %v4369_v0  ;;  %3368 = vmatpush3.msra.mxu1 %v4235_v56 }
 0x1b1   : > { %3333 = vmatprep.subr.mxu0 %v4382_v36  ;;  %3369 = vmatprep.subr.mxu1 %v4244_v31 }
 0x1b2   : > { %3312 = vmatprep.mubr.f32.mxu1 %v1678_v13  ;;  %3334 = vmatpush3.msra.mxu0 %v4382_v36 }
 0x1b3   : > { %3370 = vmatpush3.msra.mxu1 %v4244_v31  ;;  %3335 = vmatprep.subr.mxu0 %v4397_v51 }
 0x1b4   : > { %3313 = vmatmul.mubr.f32.gmra.mxu1 %v1688_v46  ;;  %3371 = vmatprep.subr.mxu1 %v4257_v49 }
 0x1b5   : > { %3336 = vmatpush3.msra.mxu0 %v4397_v51  ;;  %3372 = vmatpush3.msra.mxu1 %v4257_v49 }
 0x1b6   : > { %3337 = vmatprep.subr.mxu0 %v4409_v15  ;;  %3373 = vmatprep.subr.mxu1 %v4276_v17 }
 0x1b7   : > { %3338 = vmatpush3.msra.mxu0 %v4409_v15  ;;  %3374 = vmatpush3.msra.mxu1 %v4276_v17 }
 0x1b8   : > { %3339 = vmatprep.subr.mxu0 %v4420_v57  ;;  %3375 = vmatprep.subr.mxu1 %v4294_v47 }
 0x1b9   : > { %3340 = vmatpush3.msra.mxu0 %v4420_v57  ;;  %3376 = vmatpush3.msra.mxu1 %v4294_v47 }
 0x1ba   : > { %3341 = vmatprep.subr.mxu0 %v4430_v25  ;;  %3377 = vmatprep.subr.mxu1 %v4311_v42 }
 0x1bb   : > { %3342 = vmatpush3.msra.mxu0 %v4430_v25  ;;  %3378 = vmatpush3.msra.mxu1 %v4311_v42 }
 0x1bc   : > { %3343 = vmatprep.subr.mxu0 %v4440_v16  ;;  %3379 = vmatprep.subr.mxu1 %v4326_v7 }
 0x1bd   : > { %3344 = vmatpush3.msra.mxu0 %v4440_v16  ;;  %3380 = vmatpush3.msra.mxu1 %v4326_v7 }
 0x1be   : > { %3345 = vmatprep.subr.mxu0 %v4447_v27  ;;  %3381 = vmatprep.subr.mxu1 %v4342_v37 }
 0x1bf   : > { %3346 = vmatpush3.msra.mxu0 %v4447_v27  ;;  %3347 = vmatprep.mubr.f32.mxu0 %v4839_v38 }
 0x1c0   : > { %3382 = vmatpush3.msra.mxu1 %v4342_v37  ;;  %3348 = vmatmul.mubr.f32.vlgmr.msra.gmra.mxu0 %v4360_v10 }
 0x1c1   : > { %3383 = vmatprep.subr.mxu1 %v4357_v4  ;;  %3350 = vmatprep.mubr.f32.mxu0 %v4459_v21 }
 0x1c2   : > { %3384 = vmatpush3.msra.mxu1 %v4357_v4  ;;  %3391 = vmatprep.mubr.f32.mxu1 %v4839_v38 }
 0x1c3   : > { %3385 = vmatprep.subr.mxu1 %v4372_v9 }
 0x1c4   : > { %3386 = vmatpush3.msra.mxu1 %v4372_v9  ;;  %3351 = vmatmul.mubr.f32.gmra.mxu0 %v4461_v5 }
 0x1c5   : > { %3387 = vmatprep.subr.mxu1 %v4384_v59  ;;  %3353 = vmatprep.mubr.f32.mxu0 %v4475_v48 }
 0x1c6   : > { %3388 = vmatpush3.msra.mxu1 %v4384_v59 }
 0x1c7   : > { %3389 = vmatprep.subr.mxu1 %v4399_v6 }
 0x1c8   : > { %3390 = vmatpush3.msra.mxu1 %v4399_v6  ;;  %3354 = vmatmul.mubr.f32.gmra.mxu0 %v4478_v50 }
 0x1c9   : > { %3392 = vmatmul.mubr.f32.vlgmr.msra.gmra.mxu1 %v4360_v10  ;;  %3356 = vmatprep.mubr.f32.mxu0 %v4499_v52 }
 0x1ca   : > { %3394 = vmatprep.mubr.f32.mxu1 %v4459_v21 }
 0x1cc   : > { %3357 = vmatmul.mubr.f32.gmra.mxu0 %v4506_v39 }
 0x1cd   : > { %3395 = vmatmul.mubr.f32.gmra.mxu1 %v4461_v5 }
 0x1ce   : > { %3397 = vmatprep.mubr.f32.mxu1 %v4475_v48 }
 0x1d1   : > { %3398 = vmatmul.mubr.f32.gmra.mxu1 %v4478_v50 }
 0x1d2   : > { %3400 = vmatprep.mubr.f32.mxu1 %v4499_v52 }
 0x1d5   : > { %3401 = vmatmul.mubr.f32.gmra.mxu1 %v4506_v39 }
 0x232   : > { %v3173_v54 = vpop.f32.mrf.mxu0 }
 0x234   : > { %v1622_v56 = vpop.f32.mrf.mxu0 }
 0x239   : > { %v3217_v44 = vpop.f32.mrf.mxu1 }
 0x23a   : > { %v1850_v25 = vadd.f32 %v3217_v44, %v3173_v54 }
 0x23b   : > { %v1843_v17 = vpop.f32.mrf.mxu1 }
 0x23c   : > { %v1844_v21 = vadd.f32 %v1843_v17, %v1622_v56 }
 0x246   : > { %v3176_v45 = vpop.f32.mrf.mxu0 }
 0x248   : > { %v1642_v31 = vpop.f32.mrf.mxu0 }
 0x24b   : > { %v3179_v49 = vpop.f32.mrf.mxu0 }
 0x24d   : > { %v1662_v23 = vpop.f32.mrf.mxu0 }
 0x24f   : > { %v3220_v47 = vpop.f32.mrf.mxu1 }
 0x250   : > { %v1862_v48 = vadd.f32 %v3220_v47, %v3176_v45 }
 0x251   : > { %v1855_v42 = vpop.f32.mrf.mxu1  ;;  %v3182_v26 = vpop.f32.mrf.mxu0 }
 0x252   : > { %v1856_v52 = vadd.f32 %v1855_v42, %v1642_v31 }
 0x253   : > { %v1682_v63 = vpop.f32.mrf.mxu0 }
 0x255   : > { %v3223_v7 = vpop.f32.mrf.mxu1 }
 0x256   : > { %v1874_v3 = vadd.f32 %v3223_v7, %v3179_v49 }
 0x257   : > { %v1867_v37 = vpop.f32.mrf.mxu1  ;;  %v3261_v41 = vpop.f32.mrf.mxu0 }
 0x258   : > { %v1997_v5 = vadd.f32 %v3261_v41, %v1850_v25  ;;  %v1868_v14 = vadd.f32 %v1867_v37, %v1662_v23 }
 0x259   : > { %v1989_v10 = vpop.f32.mrf.mxu0 }
 0x25a   : > { %v3226_v4 = vpop.f32.mrf.mxu1  ;;  %v1990_v50 = vadd.f32 %v1989_v10, %v1844_v21 }
 0x25b   : > { %v1886_v12 = vadd.f32 %v3226_v4, %v3182_v26 }
 0x25c   : > { %v1879_v0 = vpop.f32.mrf.mxu1 }
 0x25d   : > { %v1880_v49 = vadd.f32 %v1879_v0, %v1682_v63 }
 0x25e   : > { %v3264_v9 = vpop.f32.mrf.mxu0 }
 0x25f   : > { %v2011_v39 = vadd.f32 %v3264_v9, %v1862_v48 }
 0x260   : > { %v2003_v59 = vpop.f32.mrf.mxu0 }
 0x261   : > { %v2004_v13 = vadd.f32 %v2003_v59, %v1856_v52 }
 0x263   : > { %v3305_v36 = vpop.f32.mrf.mxu1  ;;  %v3267_v58 = vpop.f32.mrf.mxu0 }
 0x264   : > { %v2136_v8 = vadd.f32 %v3305_v36, %v1997_v5  ;;  %v2025_v11 = vadd.f32 %v3267_v58, %v1874_v3 }
 0x265   : > { %v2127_v33 = vpop.f32.mrf.mxu1  ;;  %v2017_v6 = vpop.f32.mrf.mxu0 }
 0x266   : > { %v2128_v55 = vadd.f32 %v2127_v33, %v1990_v50  ;;  %v2018_v38 = vadd.f32 %v2017_v6, %v1868_v14 }
 0x269   : > { %v3308_v51 = vpop.f32.mrf.mxu1  ;;  %v3270_v15 = vpop.f32.mrf.mxu0 }
 0x26a   : > { %v2152_v46 = vadd.f32 %v3308_v51, %v2011_v39  ;;  %v2039_v17 = vadd.f32 %v3270_v15, %v1886_v12 }
 0x26b   : > { %v2143_v1 = vpop.f32.mrf.mxu1  ;;  %v2031_v19 = vpop.f32.mrf.mxu0 }
 0x26c   : > { %v2144_v32 = vadd.f32 %v2143_v1, %v2004_v13  ;;  %v2032_v41 = vadd.f32 %v2031_v19, %v1880_v49 }
 0x26f   : > { %v3311_v60 = vpop.f32.mrf.mxu1 }
 0x270   : > { %v2168_v56 = vadd.f32 %v3311_v60, %v2025_v11 }
 0x271   : > { %v2159_v57 = vpop.f32.mrf.mxu1 }
 0x272   : > { %v2160_v42 = vadd.f32 %v2159_v57, %v2018_v38 }
 0x274   : > { %v3314_v27 = vpop.f32.mrf.mxu1 }
 0x275   : > { %v2184_v10 = vadd.f32 %v3314_v27, %v2039_v17 }
 0x276   : > { %v2175_v43 = vpop.f32.mrf.mxu1 }
 0x277   : > { %v2176_v33 = vadd.f32 %v2175_v43, %v2032_v41 }
 0x280   : > { %v3349_v18 = vpop.f32.mrf.mxu0 }
 0x281   : > { %v2309_v20 = vadd.f32 %v3349_v18, %v2136_v8 }
 0x282   : > { %v2302_v16 = vpop.f32.mrf.mxu0 }
 0x283   : > { %v2303_v40 = vadd.f32 %v2302_v16, %v2128_v55 }
 0x284   : > { %v3352_v61 = vpop.f32.mrf.mxu0 }
 0x285   : > { %v2321_v28 = vadd.f32 %v3352_v61, %v2152_v46 }
 0x286   : > { %v2314_v2 = vpop.f32.mrf.mxu0 }
 0x287   : > { %v2315_v45 = vadd.f32 %v2314_v2, %v2144_v32 }
 0x288   : > { %v3355_v30 = vpop.f32.mrf.mxu0 }
 0x289   : > { %v3393_v53 = vpop.f32.mrf.mxu1  ;;  %v2333_v7 = vadd.f32 %v3355_v30, %v2168_v56 }
 0x28a   : > { %v2438_v34 = vadd.f32 %v3393_v53, %v2309_v20  ;;  %v2326_v29 = vpop.f32.mrf.mxu0 }
 0x28b   : > { %v2431_v24 = vpop.f32.mrf.mxu1  ;;  %v2327_v9 = vadd.f32 %v2326_v29, %v2160_v42 }
 0x28c   : > { %v2478_v62 = vadd.f32 %v2604_v22, %v2438_v34  ;;  %v2432_v35 = vadd.f32 %v2431_v24, %v2303_v40  ;;  %v3358_v47 = vpop.f32.mrf.mxu0 }
 0x28d   : > { %v3396_v54 = vpop.f32.mrf.mxu1  ;;  %v2345_v58 = vadd.f32 %v3358_v47, %v2184_v10 }
 0x28e   : > { %2486 = vst [vmem:[%s4697_s12 + $0x8] sm:$0xff] %v2478_v62  ;;  %v2477_v31 = vadd.f32 %v2604_v22, %v2432_v35  ;;  %v2450_v44 = vadd.f32 %v3396_v54, %v2321_v28  ;;  %v2338_v63 = vpop.f32.mrf.mxu0 }
 0x28f   : > { %v2443_v23 = vpop.f32.mrf.mxu1  ;;  %v2339_v15 = vadd.f32 %v2338_v63, %v2176_v33 }
 0x290   : > { %2485 = vst [vmem:[%s4697_s12] sm:$0xff] %v2477_v31  ;;  %v2480_v26 = vadd.f32 %v2604_v22, %v2450_v44  ;;  %v2444_v37 = vadd.f32 %v2443_v23, %v2315_v45 }
 0x291   : > { %v3399_v4 = vpop.f32.mrf.mxu1 }
 0x292   : > { %2488 = vst [vmem:[%s4697_s12 + $0x18] sm:$0xff] %v2480_v26  ;;  %v2479_v36 = vadd.f32 %v2604_v22, %v2444_v37  ;;  %v2462_v59 = vadd.f32 %v3399_v4, %v2333_v7 }
 0x293   : > { %v2455_v0 = vpop.f32.mrf.mxu1 }
 0x294   : > { %2487 = vst [vmem:[%s4697_s12 + $0x10] sm:$0xff] %v2479_v36  ;;  %v2482_v51 = vadd.f32 %v2604_v22, %v2462_v59  ;;  %v2456_v6 = vadd.f32 %v2455_v0, %v2327_v9 }
 0x295   : > { %v3402_v1 = vpop.f32.mrf.mxu1 }
 0x296   : > { %2490 = vst [vmem:[%s4697_s12 + $0x28] sm:$0xff] %v2482_v51  ;;  %v2481_v60 = vadd.f32 %v2604_v22, %v2456_v6  ;;  %v2474_v19 = vadd.f32 %v3402_v1, %v2345_v58 }
 0x297   : > { %v2467_v57 = vpop.f32.mrf.mxu1 }
 0x298   : > { %2489 = vst [vmem:[%s4697_s12 + $0x20] sm:$0xff] %v2481_v60  ;;  %v2484_v18 = vadd.f32 %v2604_v22, %v2474_v19  ;;  %v2468_v25 = vadd.f32 %v2467_v57, %v2339_v15 }
 0x29a   : > { %2492 = vst [vmem:[%s4697_s12 + $0x38] sm:$0xff] %v2484_v18  ;;  %v2483_v16 = vadd.f32 %v2604_v22, %v2468_v25 }
 0x29c   : > { %2491 = vst [vmem:[%s4697_s12 + $0x30] sm:$0xff] %v2483_v16 }
 0x29d   : > { %3473 = shalt.err (!%p3470_p5)
}
 0x29e   : > { %s3474_s6 = scalar_lea.hbm %s4710_s24, 1024  ;;  %s3478_s9 = scalar_lea.hbm %s4767_s4, 2048 }
 0x29f   : > { %p3475_p6 = scmp.ne.s32.totalorder %s4710_s24, %s3474_s6  ;;  %p3479_p10 = scmp.lt.s32.totalorder %s4710_s24, %s4767_s4 }
 0x2a0   : > { %p3480_p11 = scmp.lt.s32.totalorder %s3478_s9, %s3474_s6 }
 0x2a1   : > { %p3476_p7 = pnand %p3475_p6, %p3606_p4 }
 0x2a2   : > { %p3481_p12 = por %p3480_p11, %p3479_p10 }
 0x2a3   : > { %p3477_p9 = pneg %p3476_p7 }
 0x2a5   : > { %p3482_p13 = pnand %p3481_p12, %p3477_p9 }
 0x2a7   : > { %3485 = shalt.err (!%p3482_p13)
}
 0x2a8   : > { %s3539_s12 = smov 128   ;;  %s3540_s13 = smov 8  }
 0x2a9   : > { %3403 = dma.vmem_to_hbm [thread:$0]  (%p3606_p4), %s4712_s14, 1024, %s4710_s24, %s4718_s18, %s3539_s12, %s3539_s12, %s3540_s13  }
 0x2aa PF: > { %p3409_p0 = scmp.ge.s32.totalorder %s3536_s20, 2  ;;  %s2522_s21 = sand.u32 1, %s3516_s15  }
 0x2ab   : > { %s2523_s22 = scalar_lea.sflag [#allocation3], %s2522_s21 }
 0x2ac   : > { %p3406_p1 = pnand %p3409_p0, %p3613_p8 }
 0x2ae   : > { %p3407_p2 = pneg %p3406_p1 }
 0x2b0   : > { %3511 = dma.done.wait (%p3407_p2), %s2523_s22, 1024  }
 0x2b1   : > { %3513 = vsyncadd (%p3407_p2), %s2523_s22, 4294966272  ;;  %s17_s20 = sadd.s32 1, %s3536_s20   ;;  %s4840_s15 = smov %s3520_s16 }
 0x2b2   : > { %p14_p3 = scmp.ge.s32.totalorder %s17_s20, 4   ;;  %s4841_s16 = smov %s3524_s17 }
 0x2b3   : > { %s4842_s17 = smov %s3619_s28  ;;  %s4843_s18 = smov %s3532_s19 }
 0x2b4   : > { %s4844_s19 = smov %s4846_s23  ;;  %16 = sbr.rel (!%p14_p3) target bundleno = 4 (0x4), region = 78 }
 0x2b9   :  { %2528 = vsyncpa [#allocation3], 1 }
 0x2ba   :  { %2530 = vsyncpa [#allocation3 + $0x1], 1 }

</bundles_post_ra>
